<compile_context>
chip_gen: v5e
topology: v5e:2x2
jax: 0.10.0
libtpu: 0.0.40
codegen_flags: <defaults>
</compile_context>

<pallas_src>
import jax
import jax.numpy as jnp
from jax.experimental import pallas as pl
from jax.experimental.pallas import tpu as pltpu

# ---- model dimensions (small, consistent with a CLIP text encoder) ----------
B = 2          # batch
L = 8          # context length (seq)
D = 32         # transformer width (d_model)
H = 4          # attention heads
DH = D // H    # head dim
LAYERS = 2     # transformer depth
E = 16         # text_projection output dim (embed_dim)
VOCAB = 64     # vocab size


def _layer_norm(x, g, b, eps=1e-5):
    mu = jnp.mean(x, axis=-1, keepdims=True)
    var = jnp.mean((x - mu) ** 2, axis=-1, keepdims=True)
    return (x - mu) * jax.lax.rsqrt(var + eps) * g + b


# ----------------------------------------------------------------------------
# Fused kernel (single program): pos-add -> LAYERS x (LN->MHA(causal)->+res,
# LN->MLP->+res) -> EOT gather -> ln_final(rows) -> text_projection
# ----------------------------------------------------------------------------
def _encode_text_kernel(eot_ref, x_ref, pos_ref,
                        ln1g_ref, ln1b_ref, wqkv_ref, bqkv_ref, wo_ref, bo_ref,
                        ln2g_ref, ln2b_ref, wfc_ref, bfc_ref, wpr_ref, bpr_ref,
                        lnfg_ref, lnfb_ref, proj_ref, o_ref, x_sc):
    # All B sequences handled here; batch folded into the sublane dimension.
    x = x_ref[...] + pos_ref[...][None]                              # (B, L, D) f32

    # additive causal mask built in-kernel (cheap VPU iota/compare, no DMA)
    row_i = jax.lax.broadcasted_iota(jnp.int32, (L, L), 0)
    col_i = jax.lax.broadcasted_iota(jnp.int32, (L, L), 1)
    mask = jnp.where(col_i <= row_i, 0.0, -1e9).astype(jnp.float32)  # (L, L)

    scale = 1.0 / (DH ** 0.5)
    for layer in range(LAYERS):            # static loop; weights VMEM-resident
        # --- multi-head self-attention sub-block ---
        x2 = x.reshape(B * L, D)
        xn = _layer_norm(x2, ln1g_ref[layer], ln1b_ref[layer])
        qkv = jnp.dot(xn.astype(jnp.bfloat16), wqkv_ref[layer],
                      preferred_element_type=jnp.float32) + bqkv_ref[layer]
        qkv = qkv.reshape(B, L, 3 * D)
        q = qkv[..., 0:D] * scale
        k = qkv[..., D:2 * D]
        v = qkv[..., 2 * D:3 * D]

        ctx_heads = []
        for h in range(H):                 # per-head static lane slices, batched over B
            lo, hi = h * DH, (h + 1) * DH
            s = jnp.einsum('bld,bmd->blm', q[..., lo:hi], k[..., lo:hi],
                           preferred_element_type=jnp.float32) + mask[None]
            s = s - jnp.max(s, axis=-1, keepdims=True)
            p = jnp.exp(s)
            p = p * pl.reciprocal(jnp.sum(p, axis=-1, keepdims=True), approx=True)
            ctx_heads.append(jnp.einsum('blm,bmd->bld', p, v[..., lo:hi],
                                        preferred_element_type=jnp.float32))
        ctx = jnp.concatenate(ctx_heads, axis=-1).reshape(B * L, D)   # in-register
        attn = jnp.dot(ctx.astype(jnp.bfloat16), wo_ref[layer],
                       preferred_element_type=jnp.float32) + bo_ref[layer]
        x = x + attn.reshape(B, L, D)

        # --- MLP sub-block (c_fc -> QuickGELU -> c_proj) ---
        x2 = x.reshape(B * L, D)
        xn2 = _layer_norm(x2, ln2g_ref[layer], ln2b_ref[layer])
        h1 = jnp.dot(xn2.astype(jnp.bfloat16), wfc_ref[layer],
                     preferred_element_type=jnp.float32) + bfc_ref[layer]
        h1 = h1 * jax.nn.sigmoid(1.702 * h1)                          # QuickGELU
        h2 = jnp.dot(h1.astype(jnp.bfloat16), wpr_ref[layer],
                     preferred_element_type=jnp.float32) + bpr_ref[layer]
        x = x + h2.reshape(B, L, D)

    # --- EOT gather (dynamic sublane slice with SMEM scalar), ln_final, projection ---
    x_sc[...] = x.reshape(B * L, D)
    rows = [x_sc[pl.ds(b * L + eot_ref[b], 1), :] for b in range(B)]  # each (1, D)
    sel = jnp.concatenate(rows, axis=0)                               # (B, D)
    sel = _layer_norm(sel, lnfg_ref[...], lnfb_ref[...])
    o_ref[...] = jnp.dot(sel.astype(jnp.bfloat16), proj_ref[...],
                         preferred_element_type=jnp.float32)          # single (B, E) store


def encode_text(text, params):
    # Token-embedding gather (data-dependent VOCAB gather) and EOT argmax are
    # trivial XLA glue; everything else runs inside the fused Pallas kernel.
    x_emb = params["tok_emb"][text]                               # (B, L, D) f32
    eot_idx = jnp.argmax(text, axis=-1).astype(jnp.int32)         # EOT = highest token id

    st = params["stacked"]
    weight_arrays = [params["pos_emb"],
                     st["ln1g"], st["ln1b"], st["wqkv"], st["bqkv"],
                     st["wo"], st["bo"], st["ln2g"], st["ln2b"],
                     st["wfc"], st["bfc"], st["wpr"], st["bpr"],
                     params["lnf_g"], params["lnf_b"], params["text_proj"]]

    in_specs = [pl.BlockSpec((B, L, D), lambda i, eot: (0, 0, 0))]
    for w in weight_arrays:
        # full-array blocks; constant block index => stays VMEM-resident
        in_specs.append(pl.BlockSpec(w.shape, lambda i, eot, n=w.ndim: (0,) * n))

    out = pl.pallas_call(
        _encode_text_kernel,
        out_shape=jax.ShapeDtypeStruct((B, E), jnp.float32),
        grid_spec=pltpu.PrefetchScalarGridSpec(
            num_scalar_prefetch=1,
            grid=(1,),                                            # single fused program
            in_specs=in_specs,
            out_specs=pl.BlockSpec((B, E), lambda i, eot: (0, 0)),
            scratch_shapes=[pltpu.VMEM((B * L, D), jnp.float32)],
        ),
        compiler_params=pltpu.CompilerParams(
            dimension_semantics=("arbitrary",)),
    )(eot_idx, x_emb, *weight_arrays)
    return out


# ----------------------------------------------------------------------------
# Pure-JAX reference (same bf16 weights, f32 math) for a correctness check
# ----------------------------------------------------------------------------
def encode_text_ref(text, params):
    x = params["tok_emb"][text] + params["pos_emb"][None]
    st = params["stacked"]
    mask = jnp.where(jnp.arange(L)[None, :] <= jnp.arange(L)[:, None], 0.0, -1e9)
    scale = 1.0 / (DH ** 0.5)
    for layer in range(LAYERS):
        xn = _layer_norm(x, st["ln1g"][layer], st["ln1b"][layer])
        qkv = xn @ st["wqkv"][layer].astype(jnp.float32) + st["bqkv"][layer]
        q = qkv[..., :D] * scale
        k = qkv[..., D:2 * D]
        v = qkv[..., 2 * D:]
        qh = q.reshape(B, L, H, DH).transpose(0, 2, 1, 3)
        kh = k.reshape(B, L, H, DH).transpose(0, 2, 1, 3)
        vh = v.reshape(B, L, H, DH).transpose(0, 2, 1, 3)
        s = jnp.einsum('bhld,bhmd->bhlm', qh, kh) + mask
        p = jax.nn.softmax(s, axis=-1)
        ctx = jnp.einsum('bhlm,bhmd->bhld', p, vh).transpose(0, 2, 1, 3).reshape(B, L, D)
        x = x + ctx @ st["wo"][layer].astype(jnp.float32) + st["bo"][layer]
        xn2 = _layer_norm(x, st["ln2g"][layer], st["ln2b"][layer])
        h1 = xn2 @ st["wfc"][layer].astype(jnp.float32) + st["bfc"][layer]
        h1 = h1 * jax.nn.sigmoid(1.702 * h1)
        x = x + h1 @ st["wpr"][layer].astype(jnp.float32) + st["bpr"][layer]
    rows = x[jnp.arange(B), jnp.argmax(text, axis=-1)]
    rows = _layer_norm(rows, params["lnf_g"], params["lnf_b"])
    return rows @ params["text_proj"].astype(jnp.float32)


# ----------------------------------------------------------------------------
# Parameter construction (deterministic, synthetic)
# ----------------------------------------------------------------------------
def make_params(key):
    ks = iter(jax.random.split(key, 8 + LAYERS * 16))

    def nrm(shape, scale=0.02, dtype=jnp.float32):
        return (scale * jax.random.normal(next(ks), shape)).astype(dtype)

    params = {
        "tok_emb": nrm((VOCAB, D)),
        "pos_emb": nrm((L, D), 0.01),
        "lnf_g": (1.0 + nrm((1, D), 0.01)),
        "lnf_b": nrm((1, D), 0.01),
        "text_proj": nrm((D, E), dtype=jnp.bfloat16),     # bf16 matmul weight
    }
    layers = []
    for _ in range(LAYERS):
        layers.append({
            "ln1g": (1.0 + nrm((1, D), 0.01)), "ln1b": nrm((1, D), 0.01),
            "wqkv": nrm((D, 3 * D), dtype=jnp.bfloat16), "bqkv": nrm((1, 3 * D), 0.01),
            "wo": nrm((D, D), dtype=jnp.bfloat16), "bo": nrm((1, D), 0.01),
            "ln2g": (1.0 + nrm((1, D), 0.01)), "ln2b": nrm((1, D), 0.01),
            "wfc": nrm((D, 4 * D), dtype=jnp.bfloat16), "bfc": nrm((1, 4 * D), 0.01),
            "wpr": nrm((4 * D, D), dtype=jnp.bfloat16), "bpr": nrm((1, D), 0.01),
        })
    # stack per-layer weights on a leading LAYERS axis so the fused kernel can
    # keep them all resident in VMEM and loop over layers in-kernel.
    params["stacked"] = {
        name: jnp.stack([lp[name] for lp in layers], axis=0) for name in layers[0]
    }
    return params


if __name__ == "__main__":
    root = jax.random.PRNGKey(0)
    k_params, k_text = jax.random.split(root)
    params = make_params(k_params)

    # synthetic tokenized text: random body tokens, EOT (= VOCAB-1) at the end
    body = jax.random.randint(k_text, (B, L), 1, VOCAB - 1)
    text = body.at[:, -1].set(VOCAB - 1).astype(jnp.int32)

    feats = jax.block_until_ready(encode_text(text, params))      # (B, E) text features
    ref = jax.block_until_ready(encode_text_ref(text, params))

    assert feats.shape == (B, E) and feats.dtype == jnp.float32
    assert bool(jnp.all(jnp.isfinite(feats)))
    max_err = float(jnp.max(jnp.abs(feats - ref)))
    assert max_err < 5e-2, f"kernel/reference mismatch: max abs err = {max_err}"
    print("KERNEL_OK")
</pallas_src>

<mosaic_0001>
module attributes {stable_mosaic.version = 11 : i64} {
  func.func @_encode_text_kernel(%arg0: i32, %arg1: memref<2xi32, #tpu.memory_space<smem>>, %arg2: memref<2x8x32xf32, #tpu.memory_space<vmem>>, %arg3: memref<8x32xf32, #tpu.memory_space<vmem>>, %arg4: memref<2x1x32xf32, #tpu.memory_space<vmem>>, %arg5: memref<2x1x32xf32, #tpu.memory_space<vmem>>, %arg6: memref<2x32x96xbf16, #tpu.memory_space<vmem>>, %arg7: memref<2x1x96xf32, #tpu.memory_space<vmem>>, %arg8: memref<2x32x32xbf16, #tpu.memory_space<vmem>>, %arg9: memref<2x1x32xf32, #tpu.memory_space<vmem>>, %arg10: memref<2x1x32xf32, #tpu.memory_space<vmem>>, %arg11: memref<2x1x32xf32, #tpu.memory_space<vmem>>, %arg12: memref<2x32x128xbf16, #tpu.memory_space<vmem>>, %arg13: memref<2x1x128xf32, #tpu.memory_space<vmem>>, %arg14: memref<2x128x32xbf16, #tpu.memory_space<vmem>>, %arg15: memref<2x1x32xf32, #tpu.memory_space<vmem>>, %arg16: memref<1x32xf32, #tpu.memory_space<vmem>>, %arg17: memref<1x32xf32, #tpu.memory_space<vmem>>, %arg18: memref<32x16xbf16, #tpu.memory_space<vmem>>, %arg19: memref<2x16xf32, #tpu.memory_space<vmem>>, %arg20: memref<16x32xf32, #tpu.memory_space<vmem>>) attributes {dimension_semantics = [#tpu.dimension_semantics<arbitrary>], iteration_bounds = array<i64: 1>, scalar_prefetch = 1 : i64, scratch_operands = 1 : i64, tpu.core_type = #tpu.core_type<tc>, window_params = [{pipeline_mode = #tpu.pipeline_mode<synchronous>, transform_indices = @transform_0, window_bounds = array<i64: 2, 8, 32>}, {pipeline_mode = #tpu.pipeline_mode<synchronous>, transform_indices = @transform_1, window_bounds = array<i64: 8, 32>}, {pipeline_mode = #tpu.pipeline_mode<synchronous>, transform_indices = @transform_2, window_bounds = array<i64: 2, 1, 32>}, {pipeline_mode = #tpu.pipeline_mode<synchronous>, transform_indices = @transform_3, window_bounds = array<i64: 2, 1, 32>}, {pipeline_mode = #tpu.pipeline_mode<synchronous>, transform_indices = @transform_4, window_bounds = array<i64: 2, 32, 96>}, {pipeline_mode = #tpu.pipeline_mode<synchronous>, transform_indices = @transform_5, window_bounds = array<i64: 2, 1, 96>}, {pipeline_mode = #tpu.pipeline_mode<synchronous>, transform_indices = @transform_6, window_bounds = array<i64: 2, 32, 32>}, {pipeline_mode = #tpu.pipeline_mode<synchronous>, transform_indices = @transform_7, window_bounds = array<i64: 2, 1, 32>}, {pipeline_mode = #tpu.pipeline_mode<synchronous>, transform_indices = @transform_8, window_bounds = array<i64: 2, 1, 32>}, {pipeline_mode = #tpu.pipeline_mode<synchronous>, transform_indices = @transform_9, window_bounds = array<i64: 2, 1, 32>}, {pipeline_mode = #tpu.pipeline_mode<synchronous>, transform_indices = @transform_10, window_bounds = array<i64: 2, 32, 128>}, {pipeline_mode = #tpu.pipeline_mode<synchronous>, transform_indices = @transform_11, window_bounds = array<i64: 2, 1, 128>}, {pipeline_mode = #tpu.pipeline_mode<synchronous>, transform_indices = @transform_12, window_bounds = array<i64: 2, 128, 32>}, {pipeline_mode = #tpu.pipeline_mode<synchronous>, transform_indices = @transform_13, window_bounds = array<i64: 2, 1, 32>}, {pipeline_mode = #tpu.pipeline_mode<synchronous>, transform_indices = @transform_14, window_bounds = array<i64: 1, 32>}, {pipeline_mode = #tpu.pipeline_mode<synchronous>, transform_indices = @transform_15, window_bounds = array<i64: 1, 32>}, {pipeline_mode = #tpu.pipeline_mode<synchronous>, transform_indices = @transform_16, window_bounds = array<i64: 32, 16>}, {pipeline_mode = #tpu.pipeline_mode<synchronous>, transform_indices = @transform_17, window_bounds = array<i64: 2, 16>}]} {
    %c0 = arith.constant 0 : index
    %c0_0 = arith.constant 0 : index
    %c0_1 = arith.constant 0 : index
    %0 = vector.load %arg2[%c0, %c0_0, %c0_1] : memref<2x8x32xf32, #tpu.memory_space<vmem>>, vector<2x8x32xf32>
    %c0_2 = arith.constant 0 : index
    %c0_3 = arith.constant 0 : index
    %1 = vector.load %arg3[%c0_2, %c0_3] : memref<8x32xf32, #tpu.memory_space<vmem>>, vector<8x32xf32>
    %2 = vector.shape_cast %1 : vector<8x32xf32> to vector<1x8x32xf32>
    %3 = vector.broadcast %2 : vector<1x8x32xf32> to vector<2x8x32xf32>
    %4 = arith.addf %0, %3 : vector<2x8x32xf32>
    %5 = tpu.iota {dimensions = array<i32: 0>} : vector<8x8xi32>
    %6 = tpu.iota {dimensions = array<i32: 1>} : vector<8x8xi32>
    %7 = arith.cmpi sle, %6, %5 : vector<8x8xi32>
    %cst = arith.constant 0.000000e+00 : f32
    %cst_4 = arith.constant -1.000000e+09 : f32
    %8 = vector.broadcast %cst : f32 to vector<8x8xf32>
    %9 = vector.broadcast %cst_4 : f32 to vector<8x8xf32>
    %10 = arith.select %7, %8, %9 : vector<8x8xi1>, vector<8x8xf32>
    %11 = vector.shape_cast %4 : vector<2x8x32xf32> to vector<16x32xf32>
    %c0_5 = arith.constant 0 : index
    %c0_6 = arith.constant 0 : index
    %c0_7 = arith.constant 0 : index
    %12 = vector.load %arg4[%c0_5, %c0_6, %c0_7] : memref<2x1x32xf32, #tpu.memory_space<vmem>>, vector<1x1x32xf32>
    %13 = vector.shape_cast %12 : vector<1x1x32xf32> to vector<1x32xf32>
    %c0_8 = arith.constant 0 : index
    %c0_9 = arith.constant 0 : index
    %c0_10 = arith.constant 0 : index
    %14 = vector.load %arg5[%c0_8, %c0_9, %c0_10] : memref<2x1x32xf32, #tpu.memory_space<vmem>>, vector<1x1x32xf32>
    %15 = vector.shape_cast %14 : vector<1x1x32xf32> to vector<1x32xf32>
    %cst_11 = arith.constant dense<0.000000e+00> : vector<16xf32>
    %16 = vector.multi_reduction <add>, %11, %cst_11 [1] : vector<16x32xf32> to vector<16xf32>
    %17 = vector.shape_cast %16 : vector<16xf32> to vector<16x1xf32>
    %cst_12 = arith.constant 3.200000e+01 : f32
    %18 = vector.broadcast %cst_12 : f32 to vector<16x1xf32>
    %19 = arith.divf %17, %18 : vector<16x1xf32>
    %20 = vector.broadcast %19 : vector<16x1xf32> to vector<16x32xf32>
    %21 = arith.subf %11, %20 : vector<16x32xf32>
    %22 = arith.mulf %21, %21 : vector<16x32xf32>
    %cst_13 = arith.constant dense<0.000000e+00> : vector<16xf32>
    %23 = vector.multi_reduction <add>, %22, %cst_13 [1] : vector<16x32xf32> to vector<16xf32>
    %24 = vector.shape_cast %23 : vector<16xf32> to vector<16x1xf32>
    %cst_14 = arith.constant 3.200000e+01 : f32
    %25 = vector.broadcast %cst_14 : f32 to vector<16x1xf32>
    %26 = arith.divf %24, %25 : vector<16x1xf32>
    %27 = vector.broadcast %19 : vector<16x1xf32> to vector<16x32xf32>
    %28 = arith.subf %11, %27 : vector<16x32xf32>
    %cst_15 = arith.constant 9.99999974E-6 : f32
    %29 = vector.broadcast %cst_15 : f32 to vector<16x1xf32>
    %30 = arith.addf %26, %29 : vector<16x1xf32>
    %31 = math.rsqrt %30 : vector<16x1xf32>
    %32 = vector.broadcast %31 : vector<16x1xf32> to vector<16x32xf32>
    %33 = arith.mulf %28, %32 : vector<16x32xf32>
    %34 = vector.broadcast %13 : vector<1x32xf32> to vector<16x32xf32>
    %35 = arith.mulf %33, %34 : vector<16x32xf32>
    %36 = vector.broadcast %15 : vector<1x32xf32> to vector<16x32xf32>
    %37 = arith.addf %35, %36 : vector<16x32xf32>
    %38 = arith.truncf %37 : vector<16x32xf32> to vector<16x32xbf16>
    %c0_16 = arith.constant 0 : index
    %c0_17 = arith.constant 0 : index
    %c0_18 = arith.constant 0 : index
    %39 = vector.load %arg6[%c0_16, %c0_17, %c0_18] : memref<2x32x96xbf16, #tpu.memory_space<vmem>>, vector<1x32x96xbf16>
    %40 = vector.shape_cast %39 : vector<1x32x96xbf16> to vector<32x96xbf16>
    %cst_19 = arith.constant dense<0.000000e+00> : vector<16x96xf32>
    %41 = tpu.matmul %38, %40, %cst_19 {dimension_numbers = #tpu.dot_dimension_numbers<[1], [0], [0], [1], [0, 0, 1, 1], [], []>} : vector<16x32xbf16>, vector<32x96xbf16>, vector<16x96xf32> -> vector<16x96xf32>
    %c0_20 = arith.constant 0 : index
    %c0_21 = arith.constant 0 : index
    %c0_22 = arith.constant 0 : index
    %42 = vector.load %arg7[%c0_20, %c0_21, %c0_22] : memref<2x1x96xf32, #tpu.memory_space<vmem>>, vector<1x1x96xf32>
    %43 = vector.shape_cast %42 : vector<1x1x96xf32> to vector<1x96xf32>
    %44 = vector.broadcast %43 : vector<1x96xf32> to vector<16x96xf32>
    %45 = arith.addf %41, %44 : vector<16x96xf32>
    %46 = vector.shape_cast %45 : vector<16x96xf32> to vector<2x8x96xf32>
    %47 = vector.extract_strided_slice %46 {offsets = [0, 0, 0], sizes = [2, 8, 32], strides = [1, 1, 1]} : vector<2x8x96xf32> to vector<2x8x32xf32>
    %cst_23 = arith.constant 0.353553385 : f32
    %48 = vector.broadcast %cst_23 : f32 to vector<2x8x32xf32>
    %49 = arith.mulf %47, %48 : vector<2x8x32xf32>
    %50 = vector.extract_strided_slice %46 {offsets = [0, 0, 32], sizes = [2, 8, 32], strides = [1, 1, 1]} : vector<2x8x96xf32> to vector<2x8x32xf32>
    %51 = vector.extract_strided_slice %46 {offsets = [0, 0, 64], sizes = [2, 8, 32], strides = [1, 1, 1]} : vector<2x8x96xf32> to vector<2x8x32xf32>
    %52 = vector.extract_strided_slice %49 {offsets = [0, 0, 0], sizes = [2, 8, 8], strides = [1, 1, 1]} : vector<2x8x32xf32> to vector<2x8x8xf32>
    %53 = vector.extract_strided_slice %50 {offsets = [0, 0, 0], sizes = [2, 8, 8], strides = [1, 1, 1]} : vector<2x8x32xf32> to vector<2x8x8xf32>
    "tpu.trace_start"() <{level = 10 : i32, message = "bld,bmd->blm"}> : () -> ()
    %cst_24 = arith.constant dense<0.000000e+00> : vector<2x8x8xf32>
    %54 = tpu.matmul %52, %53, %cst_24 {dimension_numbers = #tpu.dot_dimension_numbers<[2], [2], [1], [1], [0, 0, 0, 1, 1, 1], [0], [0]>} : vector<2x8x8xf32>, vector<2x8x8xf32>, vector<2x8x8xf32> -> vector<2x8x8xf32>
    "tpu.trace_stop"() : () -> ()
    %55 = vector.shape_cast %10 : vector<8x8xf32> to vector<1x8x8xf32>
    %56 = vector.broadcast %55 : vector<1x8x8xf32> to vector<2x8x8xf32>
    %57 = arith.addf %54, %56 : vector<2x8x8xf32>
    %cst_25 = arith.constant dense<0xFF800000> : vector<2x8xf32>
    %58 = vector.multi_reduction <maximumf>, %57, %cst_25 [2] : vector<2x8x8xf32> to vector<2x8xf32>
    %59 = vector.shape_cast %58 : vector<2x8xf32> to vector<2x8x1xf32>
    %60 = vector.broadcast %59 : vector<2x8x1xf32> to vector<2x8x8xf32>
    %61 = arith.subf %57, %60 : vector<2x8x8xf32>
    %62 = math.exp %61 : vector<2x8x8xf32>
    %cst_26 = arith.constant dense<0.000000e+00> : vector<2x8xf32>
    %63 = vector.multi_reduction <add>, %62, %cst_26 [2] : vector<2x8x8xf32> to vector<2x8xf32>
    %64 = vector.shape_cast %63 : vector<2x8xf32> to vector<2x8x1xf32>
    %65 = tpu.reciprocal %64 {approx = true} : vector<2x8x1xf32> -> vector<2x8x1xf32>
    %66 = vector.broadcast %65 : vector<2x8x1xf32> to vector<2x8x8xf32>
    %67 = arith.mulf %62, %66 : vector<2x8x8xf32>
    %68 = vector.extract_strided_slice %51 {offsets = [0, 0, 0], sizes = [2, 8, 8], strides = [1, 1, 1]} : vector<2x8x32xf32> to vector<2x8x8xf32>
    "tpu.trace_start"() <{level = 10 : i32, message = "blm,bmd->bld"}> : () -> ()
    %cst_27 = arith.constant dense<0.000000e+00> : vector<2x8x8xf32>
    %69 = tpu.matmul %67, %68, %cst_27 {dimension_numbers = #tpu.dot_dimension_numbers<[2], [1], [1], [2], [0, 0, 0, 1, 1, 2], [0], [0]>} : vector<2x8x8xf32>, vector<2x8x8xf32>, vector<2x8x8xf32> -> vector<2x8x8xf32>
    "tpu.trace_stop"() : () -> ()
    %70 = vector.extract_strided_slice %49 {offsets = [0, 0, 8], sizes = [2, 8, 8], strides = [1, 1, 1]} : vector<2x8x32xf32> to vector<2x8x8xf32>
    %71 = vector.extract_strided_slice %50 {offsets = [0, 0, 8], sizes = [2, 8, 8], strides = [1, 1, 1]} : vector<2x8x32xf32> to vector<2x8x8xf32>
    "tpu.trace_start"() <{level = 10 : i32, message = "bld,bmd->blm"}> : () -> ()
    %cst_28 = arith.constant dense<0.000000e+00> : vector<2x8x8xf32>
    %72 = tpu.matmul %70, %71, %cst_28 {dimension_numbers = #tpu.dot_dimension_numbers<[2], [2], [1], [1], [0, 0, 0, 1, 1, 1], [0], [0]>} : vector<2x8x8xf32>, vector<2x8x8xf32>, vector<2x8x8xf32> -> vector<2x8x8xf32>
    "tpu.trace_stop"() : () -> ()
    %73 = vector.shape_cast %10 : vector<8x8xf32> to vector<1x8x8xf32>
    %74 = vector.broadcast %73 : vector<1x8x8xf32> to vector<2x8x8xf32>
    %75 = arith.addf %72, %74 : vector<2x8x8xf32>
    %cst_29 = arith.constant dense<0xFF800000> : vector<2x8xf32>
    %76 = vector.multi_reduction <maximumf>, %75, %cst_29 [2] : vector<2x8x8xf32> to vector<2x8xf32>
    %77 = vector.shape_cast %76 : vector<2x8xf32> to vector<2x8x1xf32>
    %78 = vector.broadcast %77 : vector<2x8x1xf32> to vector<2x8x8xf32>
    %79 = arith.subf %75, %78 : vector<2x8x8xf32>
    %80 = math.exp %79 : vector<2x8x8xf32>
    %cst_30 = arith.constant dense<0.000000e+00> : vector<2x8xf32>
    %81 = vector.multi_reduction <add>, %80, %cst_30 [2] : vector<2x8x8xf32> to vector<2x8xf32>
    %82 = vector.shape_cast %81 : vector<2x8xf32> to vector<2x8x1xf32>
    %83 = tpu.reciprocal %82 {approx = true} : vector<2x8x1xf32> -> vector<2x8x1xf32>
    %84 = vector.broadcast %83 : vector<2x8x1xf32> to vector<2x8x8xf32>
    %85 = arith.mulf %80, %84 : vector<2x8x8xf32>
    %86 = vector.extract_strided_slice %51 {offsets = [0, 0, 8], sizes = [2, 8, 8], strides = [1, 1, 1]} : vector<2x8x32xf32> to vector<2x8x8xf32>
    "tpu.trace_start"() <{level = 10 : i32, message = "blm,bmd->bld"}> : () -> ()
    %cst_31 = arith.constant dense<0.000000e+00> : vector<2x8x8xf32>
    %87 = tpu.matmul %85, %86, %cst_31 {dimension_numbers = #tpu.dot_dimension_numbers<[2], [1], [1], [2], [0, 0, 0, 1, 1, 2], [0], [0]>} : vector<2x8x8xf32>, vector<2x8x8xf32>, vector<2x8x8xf32> -> vector<2x8x8xf32>
    "tpu.trace_stop"() : () -> ()
    %88 = vector.extract_strided_slice %49 {offsets = [0, 0, 16], sizes = [2, 8, 8], strides = [1, 1, 1]} : vector<2x8x32xf32> to vector<2x8x8xf32>
    %89 = vector.extract_strided_slice %50 {offsets = [0, 0, 16], sizes = [2, 8, 8], strides = [1, 1, 1]} : vector<2x8x32xf32> to vector<2x8x8xf32>
    "tpu.trace_start"() <{level = 10 : i32, message = "bld,bmd->blm"}> : () -> ()
    %cst_32 = arith.constant dense<0.000000e+00> : vector<2x8x8xf32>
    %90 = tpu.matmul %88, %89, %cst_32 {dimension_numbers = #tpu.dot_dimension_numbers<[2], [2], [1], [1], [0, 0, 0, 1, 1, 1], [0], [0]>} : vector<2x8x8xf32>, vector<2x8x8xf32>, vector<2x8x8xf32> -> vector<2x8x8xf32>
    "tpu.trace_stop"() : () -> ()
    %91 = vector.shape_cast %10 : vector<8x8xf32> to vector<1x8x8xf32>
    %92 = vector.broadcast %91 : vector<1x8x8xf32> to vector<2x8x8xf32>
    %93 = arith.addf %90, %92 : vector<2x8x8xf32>
    %cst_33 = arith.constant dense<0xFF800000> : vector<2x8xf32>
    %94 = vector.multi_reduction <maximumf>, %93, %cst_33 [2] : vector<2x8x8xf32> to vector<2x8xf32>
    %95 = vector.shape_cast %94 : vector<2x8xf32> to vector<2x8x1xf32>
    %96 = vector.broadcast %95 : vector<2x8x1xf32> to vector<2x8x8xf32>
    %97 = arith.subf %93, %96 : vector<2x8x8xf32>
    %98 = math.exp %97 : vector<2x8x8xf32>
    %cst_34 = arith.constant dense<0.000000e+00> : vector<2x8xf32>
    %99 = vector.multi_reduction <add>, %98, %cst_34 [2] : vector<2x8x8xf32> to vector<2x8xf32>
    %100 = vector.shape_cast %99 : vector<2x8xf32> to vector<2x8x1xf32>
    %101 = tpu.reciprocal %100 {approx = true} : vector<2x8x1xf32> -> vector<2x8x1xf32>
    %102 = vector.broadcast %101 : vector<2x8x1xf32> to vector<2x8x8xf32>
    %103 = arith.mulf %98, %102 : vector<2x8x8xf32>
    %104 = vector.extract_strided_slice %51 {offsets = [0, 0, 16], sizes = [2, 8, 8], strides = [1, 1, 1]} : vector<2x8x32xf32> to vector<2x8x8xf32>
    "tpu.trace_start"() <{level = 10 : i32, message = "blm,bmd->bld"}> : () -> ()
    %cst_35 = arith.constant dense<0.000000e+00> : vector<2x8x8xf32>
    %105 = tpu.matmul %103, %104, %cst_35 {dimension_numbers = #tpu.dot_dimension_numbers<[2], [1], [1], [2], [0, 0, 0, 1, 1, 2], [0], [0]>} : vector<2x8x8xf32>, vector<2x8x8xf32>, vector<2x8x8xf32> -> vector<2x8x8xf32>
    "tpu.trace_stop"() : () -> ()
    %106 = vector.extract_strided_slice %49 {offsets = [0, 0, 24], sizes = [2, 8, 8], strides = [1, 1, 1]} : vector<2x8x32xf32> to vector<2x8x8xf32>
    %107 = vector.extract_strided_slice %50 {offsets = [0, 0, 24], sizes = [2, 8, 8], strides = [1, 1, 1]} : vector<2x8x32xf32> to vector<2x8x8xf32>
    "tpu.trace_start"() <{level = 10 : i32, message = "bld,bmd->blm"}> : () -> ()
    %cst_36 = arith.constant dense<0.000000e+00> : vector<2x8x8xf32>
    %108 = tpu.matmul %106, %107, %cst_36 {dimension_numbers = #tpu.dot_dimension_numbers<[2], [2], [1], [1], [0, 0, 0, 1, 1, 1], [0], [0]>} : vector<2x8x8xf32>, vector<2x8x8xf32>, vector<2x8x8xf32> -> vector<2x8x8xf32>
    "tpu.trace_stop"() : () -> ()
    %109 = vector.shape_cast %10 : vector<8x8xf32> to vector<1x8x8xf32>
    %110 = vector.broadcast %109 : vector<1x8x8xf32> to vector<2x8x8xf32>
    %111 = arith.addf %108, %110 : vector<2x8x8xf32>
    %cst_37 = arith.constant dense<0xFF800000> : vector<2x8xf32>
    %112 = vector.multi_reduction <maximumf>, %111, %cst_37 [2] : vector<2x8x8xf32> to vector<2x8xf32>
    %113 = vector.shape_cast %112 : vector<2x8xf32> to vector<2x8x1xf32>
    %114 = vector.broadcast %113 : vector<2x8x1xf32> to vector<2x8x8xf32>
    %115 = arith.subf %111, %114 : vector<2x8x8xf32>
    %116 = math.exp %115 : vector<2x8x8xf32>
    %cst_38 = arith.constant dense<0.000000e+00> : vector<2x8xf32>
    %117 = vector.multi_reduction <add>, %116, %cst_38 [2] : vector<2x8x8xf32> to vector<2x8xf32>
    %118 = vector.shape_cast %117 : vector<2x8xf32> to vector<2x8x1xf32>
    %119 = tpu.reciprocal %118 {approx = true} : vector<2x8x1xf32> -> vector<2x8x1xf32>
    %120 = vector.broadcast %119 : vector<2x8x1xf32> to vector<2x8x8xf32>
    %121 = arith.mulf %116, %120 : vector<2x8x8xf32>
    %122 = vector.extract_strided_slice %51 {offsets = [0, 0, 24], sizes = [2, 8, 8], strides = [1, 1, 1]} : vector<2x8x32xf32> to vector<2x8x8xf32>
    "tpu.trace_start"() <{level = 10 : i32, message = "blm,bmd->bld"}> : () -> ()
    %cst_39 = arith.constant dense<0.000000e+00> : vector<2x8x8xf32>
    %123 = tpu.matmul %121, %122, %cst_39 {dimension_numbers = #tpu.dot_dimension_numbers<[2], [1], [1], [2], [0, 0, 0, 1, 1, 2], [0], [0]>} : vector<2x8x8xf32>, vector<2x8x8xf32>, vector<2x8x8xf32> -> vector<2x8x8xf32>
    "tpu.trace_stop"() : () -> ()
    %124 = tpu.concatenate %69, %87, %105, %123 in 2 : vector<2x8x8xf32>, vector<2x8x8xf32>, vector<2x8x8xf32>, vector<2x8x8xf32> -> vector<2x8x32xf32>
    %125 = vector.shape_cast %124 : vector<2x8x32xf32> to vector<16x32xf32>
    %126 = arith.truncf %125 : vector<16x32xf32> to vector<16x32xbf16>
    %c0_40 = arith.constant 0 : index
    %c0_41 = arith.constant 0 : index
    %c0_42 = arith.constant 0 : index
    %127 = vector.load %arg8[%c0_40, %c0_41, %c0_42] : memref<2x32x32xbf16, #tpu.memory_space<vmem>>, vector<1x32x32xbf16>
    %128 = vector.shape_cast %127 : vector<1x32x32xbf16> to vector<32x32xbf16>
    %cst_43 = arith.constant dense<0.000000e+00> : vector<16x32xf32>
    %129 = tpu.matmul %126, %128, %cst_43 {dimension_numbers = #tpu.dot_dimension_numbers<[1], [0], [0], [1], [0, 0, 1, 1], [], []>} : vector<16x32xbf16>, vector<32x32xbf16>, vector<16x32xf32> -> vector<16x32xf32>
    %c0_44 = arith.constant 0 : index
    %c0_45 = arith.constant 0 : index
    %c0_46 = arith.constant 0 : index
    %130 = vector.load %arg9[%c0_44, %c0_45, %c0_46] : memref<2x1x32xf32, #tpu.memory_space<vmem>>, vector<1x1x32xf32>
    %131 = vector.shape_cast %130 : vector<1x1x32xf32> to vector<1x32xf32>
    %132 = vector.broadcast %131 : vector<1x32xf32> to vector<16x32xf32>
    %133 = arith.addf %129, %132 : vector<16x32xf32>
    %134 = vector.shape_cast %133 : vector<16x32xf32> to vector<2x8x32xf32>
    %135 = arith.addf %4, %134 : vector<2x8x32xf32>
    %136 = vector.shape_cast %135 : vector<2x8x32xf32> to vector<16x32xf32>
    %c0_47 = arith.constant 0 : index
    %c0_48 = arith.constant 0 : index
    %c0_49 = arith.constant 0 : index
    %137 = vector.load %arg10[%c0_47, %c0_48, %c0_49] : memref<2x1x32xf32, #tpu.memory_space<vmem>>, vector<1x1x32xf32>
    %138 = vector.shape_cast %137 : vector<1x1x32xf32> to vector<1x32xf32>
    %c0_50 = arith.constant 0 : index
    %c0_51 = arith.constant 0 : index
    %c0_52 = arith.constant 0 : index
    %139 = vector.load %arg11[%c0_50, %c0_51, %c0_52] : memref<2x1x32xf32, #tpu.memory_space<vmem>>, vector<1x1x32xf32>
    %140 = vector.shape_cast %139 : vector<1x1x32xf32> to vector<1x32xf32>
    %cst_53 = arith.constant dense<0.000000e+00> : vector<16xf32>
    %141 = vector.multi_reduction <add>, %136, %cst_53 [1] : vector<16x32xf32> to vector<16xf32>
    %142 = vector.shape_cast %141 : vector<16xf32> to vector<16x1xf32>
    %cst_54 = arith.constant 3.200000e+01 : f32
    %143 = vector.broadcast %cst_54 : f32 to vector<16x1xf32>
    %144 = arith.divf %142, %143 : vector<16x1xf32>
    %145 = vector.broadcast %144 : vector<16x1xf32> to vector<16x32xf32>
    %146 = arith.subf %136, %145 : vector<16x32xf32>
    %147 = arith.mulf %146, %146 : vector<16x32xf32>
    %cst_55 = arith.constant dense<0.000000e+00> : vector<16xf32>
    %148 = vector.multi_reduction <add>, %147, %cst_55 [1] : vector<16x32xf32> to vector<16xf32>
    %149 = vector.shape_cast %148 : vector<16xf32> to vector<16x1xf32>
    %cst_56 = arith.constant 3.200000e+01 : f32
    %150 = vector.broadcast %cst_56 : f32 to vector<16x1xf32>
    %151 = arith.divf %149, %150 : vector<16x1xf32>
    %152 = vector.broadcast %144 : vector<16x1xf32> to vector<16x32xf32>
    %153 = arith.subf %136, %152 : vector<16x32xf32>
    %cst_57 = arith.constant 9.99999974E-6 : f32
    %154 = vector.broadcast %cst_57 : f32 to vector<16x1xf32>
    %155 = arith.addf %151, %154 : vector<16x1xf32>
    %156 = math.rsqrt %155 : vector<16x1xf32>
    %157 = vector.broadcast %156 : vector<16x1xf32> to vector<16x32xf32>
    %158 = arith.mulf %153, %157 : vector<16x32xf32>
    %159 = vector.broadcast %138 : vector<1x32xf32> to vector<16x32xf32>
    %160 = arith.mulf %158, %159 : vector<16x32xf32>
    %161 = vector.broadcast %140 : vector<1x32xf32> to vector<16x32xf32>
    %162 = arith.addf %160, %161 : vector<16x32xf32>
    %163 = arith.truncf %162 : vector<16x32xf32> to vector<16x32xbf16>
    %c0_58 = arith.constant 0 : index
    %c0_59 = arith.constant 0 : index
    %c0_60 = arith.constant 0 : index
    %164 = vector.load %arg12[%c0_58, %c0_59, %c0_60] : memref<2x32x128xbf16, #tpu.memory_space<vmem>>, vector<1x32x128xbf16>
    %165 = vector.shape_cast %164 : vector<1x32x128xbf16> to vector<32x128xbf16>
    %cst_61 = arith.constant dense<0.000000e+00> : vector<16x128xf32>
    %166 = tpu.matmul %163, %165, %cst_61 {dimension_numbers = #tpu.dot_dimension_numbers<[1], [0], [0], [1], [0, 0, 1, 1], [], []>} : vector<16x32xbf16>, vector<32x128xbf16>, vector<16x128xf32> -> vector<16x128xf32>
    %c0_62 = arith.constant 0 : index
    %c0_63 = arith.constant 0 : index
    %c0_64 = arith.constant 0 : index
    %167 = vector.load %arg13[%c0_62, %c0_63, %c0_64] : memref<2x1x128xf32, #tpu.memory_space<vmem>>, vector<1x1x128xf32>
    %168 = vector.shape_cast %167 : vector<1x1x128xf32> to vector<1x128xf32>
    %169 = vector.broadcast %168 : vector<1x128xf32> to vector<16x128xf32>
    %170 = arith.addf %166, %169 : vector<16x128xf32>
    %cst_65 = arith.constant 1.702000e+00 : f32
    %171 = vector.broadcast %cst_65 : f32 to vector<16x128xf32>
    %172 = arith.mulf %171, %170 : vector<16x128xf32>
    %173 = arith.negf %172 : vector<16x128xf32>
    %174 = math.exp %173 : vector<16x128xf32>
    %cst_66 = arith.constant 1.000000e+00 : f32
    %175 = vector.broadcast %cst_66 : f32 to vector<16x128xf32>
    %176 = arith.addf %175, %174 : vector<16x128xf32>
    %177 = arith.divf %175, %176 : vector<16x128xf32>
    %178 = arith.mulf %170, %177 : vector<16x128xf32>
    %179 = arith.truncf %178 : vector<16x128xf32> to vector<16x128xbf16>
    %c0_67 = arith.constant 0 : index
    %c0_68 = arith.constant 0 : index
    %c0_69 = arith.constant 0 : index
    %180 = vector.load %arg14[%c0_67, %c0_68, %c0_69] : memref<2x128x32xbf16, #tpu.memory_space<vmem>>, vector<1x128x32xbf16>
    %181 = vector.shape_cast %180 : vector<1x128x32xbf16> to vector<128x32xbf16>
    %cst_70 = arith.constant dense<0.000000e+00> : vector<16x32xf32>
    %182 = tpu.matmul %179, %181, %cst_70 {dimension_numbers = #tpu.dot_dimension_numbers<[1], [0], [0], [1], [0, 0, 1, 1], [], []>} : vector<16x128xbf16>, vector<128x32xbf16>, vector<16x32xf32> -> vector<16x32xf32>
    %c0_71 = arith.constant 0 : index
    %c0_72 = arith.constant 0 : index
    %c0_73 = arith.constant 0 : index
    %183 = vector.load %arg15[%c0_71, %c0_72, %c0_73] : memref<2x1x32xf32, #tpu.memory_space<vmem>>, vector<1x1x32xf32>
    %184 = vector.shape_cast %183 : vector<1x1x32xf32> to vector<1x32xf32>
    %185 = vector.broadcast %184 : vector<1x32xf32> to vector<16x32xf32>
    %186 = arith.addf %182, %185 : vector<16x32xf32>
    %187 = vector.shape_cast %186 : vector<16x32xf32> to vector<2x8x32xf32>
    %188 = arith.addf %135, %187 : vector<2x8x32xf32>
    %189 = vector.shape_cast %188 : vector<2x8x32xf32> to vector<16x32xf32>
    %c1 = arith.constant 1 : index
    %c0_74 = arith.constant 0 : index
    %c0_75 = arith.constant 0 : index
    %190 = vector.load %arg4[%c1, %c0_74, %c0_75] : memref<2x1x32xf32, #tpu.memory_space<vmem>>, vector<1x1x32xf32>
    %191 = vector.shape_cast %190 : vector<1x1x32xf32> to vector<1x32xf32>
    %c1_76 = arith.constant 1 : index
    %c0_77 = arith.constant 0 : index
    %c0_78 = arith.constant 0 : index
    %192 = vector.load %arg5[%c1_76, %c0_77, %c0_78] : memref<2x1x32xf32, #tpu.memory_space<vmem>>, vector<1x1x32xf32>
    %193 = vector.shape_cast %192 : vector<1x1x32xf32> to vector<1x32xf32>
    %cst_79 = arith.constant dense<0.000000e+00> : vector<16xf32>
    %194 = vector.multi_reduction <add>, %189, %cst_79 [1] : vector<16x32xf32> to vector<16xf32>
    %195 = vector.shape_cast %194 : vector<16xf32> to vector<16x1xf32>
    %cst_80 = arith.constant 3.200000e+01 : f32
    %196 = vector.broadcast %cst_80 : f32 to vector<16x1xf32>
    %197 = arith.divf %195, %196 : vector<16x1xf32>
    %198 = vector.broadcast %197 : vector<16x1xf32> to vector<16x32xf32>
    %199 = arith.subf %189, %198 : vector<16x32xf32>
    %200 = arith.mulf %199, %199 : vector<16x32xf32>
    %cst_81 = arith.constant dense<0.000000e+00> : vector<16xf32>
    %201 = vector.multi_reduction <add>, %200, %cst_81 [1] : vector<16x32xf32> to vector<16xf32>
    %202 = vector.shape_cast %201 : vector<16xf32> to vector<16x1xf32>
    %cst_82 = arith.constant 3.200000e+01 : f32
    %203 = vector.broadcast %cst_82 : f32 to vector<16x1xf32>
    %204 = arith.divf %202, %203 : vector<16x1xf32>
    %205 = vector.broadcast %197 : vector<16x1xf32> to vector<16x32xf32>
    %206 = arith.subf %189, %205 : vector<16x32xf32>
    %cst_83 = arith.constant 9.99999974E-6 : f32
    %207 = vector.broadcast %cst_83 : f32 to vector<16x1xf32>
    %208 = arith.addf %204, %207 : vector<16x1xf32>
    %209 = math.rsqrt %208 : vector<16x1xf32>
    %210 = vector.broadcast %209 : vector<16x1xf32> to vector<16x32xf32>
    %211 = arith.mulf %206, %210 : vector<16x32xf32>
    %212 = vector.broadcast %191 : vector<1x32xf32> to vector<16x32xf32>
    %213 = arith.mulf %211, %212 : vector<16x32xf32>
    %214 = vector.broadcast %193 : vector<1x32xf32> to vector<16x32xf32>
    %215 = arith.addf %213, %214 : vector<16x32xf32>
    %216 = arith.truncf %215 : vector<16x32xf32> to vector<16x32xbf16>
    %c1_84 = arith.constant 1 : index
    %c0_85 = arith.constant 0 : index
    %c0_86 = arith.constant 0 : index
    %217 = vector.load %arg6[%c1_84, %c0_85, %c0_86] : memref<2x32x96xbf16, #tpu.memory_space<vmem>>, vector<1x32x96xbf16>
    %218 = vector.shape_cast %217 : vector<1x32x96xbf16> to vector<32x96xbf16>
    %cst_87 = arith.constant dense<0.000000e+00> : vector<16x96xf32>
    %219 = tpu.matmul %216, %218, %cst_87 {dimension_numbers = #tpu.dot_dimension_numbers<[1], [0], [0], [1], [0, 0, 1, 1], [], []>} : vector<16x32xbf16>, vector<32x96xbf16>, vector<16x96xf32> -> vector<16x96xf32>
    %c1_88 = arith.constant 1 : index
    %c0_89 = arith.constant 0 : index
    %c0_90 = arith.constant 0 : index
    %220 = vector.load %arg7[%c1_88, %c0_89, %c0_90] : memref<2x1x96xf32, #tpu.memory_space<vmem>>, vector<1x1x96xf32>
    %221 = vector.shape_cast %220 : vector<1x1x96xf32> to vector<1x96xf32>
    %222 = vector.broadcast %221 : vector<1x96xf32> to vector<16x96xf32>
    %223 = arith.addf %219, %222 : vector<16x96xf32>
    %224 = vector.shape_cast %223 : vector<16x96xf32> to vector<2x8x96xf32>
    %225 = vector.extract_strided_slice %224 {offsets = [0, 0, 0], sizes = [2, 8, 32], strides = [1, 1, 1]} : vector<2x8x96xf32> to vector<2x8x32xf32>
    %cst_91 = arith.constant 0.353553385 : f32
    %226 = vector.broadcast %cst_91 : f32 to vector<2x8x32xf32>
    %227 = arith.mulf %225, %226 : vector<2x8x32xf32>
    %228 = vector.extract_strided_slice %224 {offsets = [0, 0, 32], sizes = [2, 8, 32], strides = [1, 1, 1]} : vector<2x8x96xf32> to vector<2x8x32xf32>
    %229 = vector.extract_strided_slice %224 {offsets = [0, 0, 64], sizes = [2, 8, 32], strides = [1, 1, 1]} : vector<2x8x96xf32> to vector<2x8x32xf32>
    %230 = vector.extract_strided_slice %227 {offsets = [0, 0, 0], sizes = [2, 8, 8], strides = [1, 1, 1]} : vector<2x8x32xf32> to vector<2x8x8xf32>
    %231 = vector.extract_strided_slice %228 {offsets = [0, 0, 0], sizes = [2, 8, 8], strides = [1, 1, 1]} : vector<2x8x32xf32> to vector<2x8x8xf32>
    "tpu.trace_start"() <{level = 10 : i32, message = "bld,bmd->blm"}> : () -> ()
    %cst_92 = arith.constant dense<0.000000e+00> : vector<2x8x8xf32>
    %232 = tpu.matmul %230, %231, %cst_92 {dimension_numbers = #tpu.dot_dimension_numbers<[2], [2], [1], [1], [0, 0, 0, 1, 1, 1], [0], [0]>} : vector<2x8x8xf32>, vector<2x8x8xf32>, vector<2x8x8xf32> -> vector<2x8x8xf32>
    "tpu.trace_stop"() : () -> ()
    %233 = vector.shape_cast %10 : vector<8x8xf32> to vector<1x8x8xf32>
    %234 = vector.broadcast %233 : vector<1x8x8xf32> to vector<2x8x8xf32>
    %235 = arith.addf %232, %234 : vector<2x8x8xf32>
    %cst_93 = arith.constant dense<0xFF800000> : vector<2x8xf32>
    %236 = vector.multi_reduction <maximumf>, %235, %cst_93 [2] : vector<2x8x8xf32> to vector<2x8xf32>
    %237 = vector.shape_cast %236 : vector<2x8xf32> to vector<2x8x1xf32>
    %238 = vector.broadcast %237 : vector<2x8x1xf32> to vector<2x8x8xf32>
    %239 = arith.subf %235, %238 : vector<2x8x8xf32>
    %240 = math.exp %239 : vector<2x8x8xf32>
    %cst_94 = arith.constant dense<0.000000e+00> : vector<2x8xf32>
    %241 = vector.multi_reduction <add>, %240, %cst_94 [2] : vector<2x8x8xf32> to vector<2x8xf32>
    %242 = vector.shape_cast %241 : vector<2x8xf32> to vector<2x8x1xf32>
    %243 = tpu.reciprocal %242 {approx = true} : vector<2x8x1xf32> -> vector<2x8x1xf32>
    %244 = vector.broadcast %243 : vector<2x8x1xf32> to vector<2x8x8xf32>
    %245 = arith.mulf %240, %244 : vector<2x8x8xf32>
    %246 = vector.extract_strided_slice %229 {offsets = [0, 0, 0], sizes = [2, 8, 8], strides = [1, 1, 1]} : vector<2x8x32xf32> to vector<2x8x8xf32>
    "tpu.trace_start"() <{level = 10 : i32, message = "blm,bmd->bld"}> : () -> ()
    %cst_95 = arith.constant dense<0.000000e+00> : vector<2x8x8xf32>
    %247 = tpu.matmul %245, %246, %cst_95 {dimension_numbers = #tpu.dot_dimension_numbers<[2], [1], [1], [2], [0, 0, 0, 1, 1, 2], [0], [0]>} : vector<2x8x8xf32>, vector<2x8x8xf32>, vector<2x8x8xf32> -> vector<2x8x8xf32>
    "tpu.trace_stop"() : () -> ()
    %248 = vector.extract_strided_slice %227 {offsets = [0, 0, 8], sizes = [2, 8, 8], strides = [1, 1, 1]} : vector<2x8x32xf32> to vector<2x8x8xf32>
    %249 = vector.extract_strided_slice %228 {offsets = [0, 0, 8], sizes = [2, 8, 8], strides = [1, 1, 1]} : vector<2x8x32xf32> to vector<2x8x8xf32>
    "tpu.trace_start"() <{level = 10 : i32, message = "bld,bmd->blm"}> : () -> ()
    %cst_96 = arith.constant dense<0.000000e+00> : vector<2x8x8xf32>
    %250 = tpu.matmul %248, %249, %cst_96 {dimension_numbers = #tpu.dot_dimension_numbers<[2], [2], [1], [1], [0, 0, 0, 1, 1, 1], [0], [0]>} : vector<2x8x8xf32>, vector<2x8x8xf32>, vector<2x8x8xf32> -> vector<2x8x8xf32>
    "tpu.trace_stop"() : () -> ()
    %251 = vector.shape_cast %10 : vector<8x8xf32> to vector<1x8x8xf32>
    %252 = vector.broadcast %251 : vector<1x8x8xf32> to vector<2x8x8xf32>
    %253 = arith.addf %250, %252 : vector<2x8x8xf32>
    %cst_97 = arith.constant dense<0xFF800000> : vector<2x8xf32>
    %254 = vector.multi_reduction <maximumf>, %253, %cst_97 [2] : vector<2x8x8xf32> to vector<2x8xf32>
    %255 = vector.shape_cast %254 : vector<2x8xf32> to vector<2x8x1xf32>
    %256 = vector.broadcast %255 : vector<2x8x1xf32> to vector<2x8x8xf32>
    %257 = arith.subf %253, %256 : vector<2x8x8xf32>
    %258 = math.exp %257 : vector<2x8x8xf32>
    %cst_98 = arith.constant dense<0.000000e+00> : vector<2x8xf32>
    %259 = vector.multi_reduction <add>, %258, %cst_98 [2] : vector<2x8x8xf32> to vector<2x8xf32>
    %260 = vector.shape_cast %259 : vector<2x8xf32> to vector<2x8x1xf32>
    %261 = tpu.reciprocal %260 {approx = true} : vector<2x8x1xf32> -> vector<2x8x1xf32>
    %262 = vector.broadcast %261 : vector<2x8x1xf32> to vector<2x8x8xf32>
    %263 = arith.mulf %258, %262 : vector<2x8x8xf32>
    %264 = vector.extract_strided_slice %229 {offsets = [0, 0, 8], sizes = [2, 8, 8], strides = [1, 1, 1]} : vector<2x8x32xf32> to vector<2x8x8xf32>
    "tpu.trace_start"() <{level = 10 : i32, message = "blm,bmd->bld"}> : () -> ()
    %cst_99 = arith.constant dense<0.000000e+00> : vector<2x8x8xf32>
    %265 = tpu.matmul %263, %264, %cst_99 {dimension_numbers = #tpu.dot_dimension_numbers<[2], [1], [1], [2], [0, 0, 0, 1, 1, 2], [0], [0]>} : vector<2x8x8xf32>, vector<2x8x8xf32>, vector<2x8x8xf32> -> vector<2x8x8xf32>
    "tpu.trace_stop"() : () -> ()
    %266 = vector.extract_strided_slice %227 {offsets = [0, 0, 16], sizes = [2, 8, 8], strides = [1, 1, 1]} : vector<2x8x32xf32> to vector<2x8x8xf32>
    %267 = vector.extract_strided_slice %228 {offsets = [0, 0, 16], sizes = [2, 8, 8], strides = [1, 1, 1]} : vector<2x8x32xf32> to vector<2x8x8xf32>
    "tpu.trace_start"() <{level = 10 : i32, message = "bld,bmd->blm"}> : () -> ()
    %cst_100 = arith.constant dense<0.000000e+00> : vector<2x8x8xf32>
    %268 = tpu.matmul %266, %267, %cst_100 {dimension_numbers = #tpu.dot_dimension_numbers<[2], [2], [1], [1], [0, 0, 0, 1, 1, 1], [0], [0]>} : vector<2x8x8xf32>, vector<2x8x8xf32>, vector<2x8x8xf32> -> vector<2x8x8xf32>
    "tpu.trace_stop"() : () -> ()
    %269 = vector.shape_cast %10 : vector<8x8xf32> to vector<1x8x8xf32>
    %270 = vector.broadcast %269 : vector<1x8x8xf32> to vector<2x8x8xf32>
    %271 = arith.addf %268, %270 : vector<2x8x8xf32>
    %cst_101 = arith.constant dense<0xFF800000> : vector<2x8xf32>
    %272 = vector.multi_reduction <maximumf>, %271, %cst_101 [2] : vector<2x8x8xf32> to vector<2x8xf32>
    %273 = vector.shape_cast %272 : vector<2x8xf32> to vector<2x8x1xf32>
    %274 = vector.broadcast %273 : vector<2x8x1xf32> to vector<2x8x8xf32>
    %275 = arith.subf %271, %274 : vector<2x8x8xf32>
    %276 = math.exp %275 : vector<2x8x8xf32>
    %cst_102 = arith.constant dense<0.000000e+00> : vector<2x8xf32>
    %277 = vector.multi_reduction <add>, %276, %cst_102 [2] : vector<2x8x8xf32> to vector<2x8xf32>
    %278 = vector.shape_cast %277 : vector<2x8xf32> to vector<2x8x1xf32>
    %279 = tpu.reciprocal %278 {approx = true} : vector<2x8x1xf32> -> vector<2x8x1xf32>
    %280 = vector.broadcast %279 : vector<2x8x1xf32> to vector<2x8x8xf32>
    %281 = arith.mulf %276, %280 : vector<2x8x8xf32>
    %282 = vector.extract_strided_slice %229 {offsets = [0, 0, 16], sizes = [2, 8, 8], strides = [1, 1, 1]} : vector<2x8x32xf32> to vector<2x8x8xf32>
    "tpu.trace_start"() <{level = 10 : i32, message = "blm,bmd->bld"}> : () -> ()
    %cst_103 = arith.constant dense<0.000000e+00> : vector<2x8x8xf32>
    %283 = tpu.matmul %281, %282, %cst_103 {dimension_numbers = #tpu.dot_dimension_numbers<[2], [1], [1], [2], [0, 0, 0, 1, 1, 2], [0], [0]>} : vector<2x8x8xf32>, vector<2x8x8xf32>, vector<2x8x8xf32> -> vector<2x8x8xf32>
    "tpu.trace_stop"() : () -> ()
    %284 = vector.extract_strided_slice %227 {offsets = [0, 0, 24], sizes = [2, 8, 8], strides = [1, 1, 1]} : vector<2x8x32xf32> to vector<2x8x8xf32>
    %285 = vector.extract_strided_slice %228 {offsets = [0, 0, 24], sizes = [2, 8, 8], strides = [1, 1, 1]} : vector<2x8x32xf32> to vector<2x8x8xf32>
    "tpu.trace_start"() <{level = 10 : i32, message = "bld,bmd->blm"}> : () -> ()
    %cst_104 = arith.constant dense<0.000000e+00> : vector<2x8x8xf32>
    %286 = tpu.matmul %284, %285, %cst_104 {dimension_numbers = #tpu.dot_dimension_numbers<[2], [2], [1], [1], [0, 0, 0, 1, 1, 1], [0], [0]>} : vector<2x8x8xf32>, vector<2x8x8xf32>, vector<2x8x8xf32> -> vector<2x8x8xf32>
    "tpu.trace_stop"() : () -> ()
    %287 = vector.shape_cast %10 : vector<8x8xf32> to vector<1x8x8xf32>
    %288 = vector.broadcast %287 : vector<1x8x8xf32> to vector<2x8x8xf32>
    %289 = arith.addf %286, %288 : vector<2x8x8xf32>
    %cst_105 = arith.constant dense<0xFF800000> : vector<2x8xf32>
    %290 = vector.multi_reduction <maximumf>, %289, %cst_105 [2] : vector<2x8x8xf32> to vector<2x8xf32>
    %291 = vector.shape_cast %290 : vector<2x8xf32> to vector<2x8x1xf32>
    %292 = vector.broadcast %291 : vector<2x8x1xf32> to vector<2x8x8xf32>
    %293 = arith.subf %289, %292 : vector<2x8x8xf32>
    %294 = math.exp %293 : vector<2x8x8xf32>
    %cst_106 = arith.constant dense<0.000000e+00> : vector<2x8xf32>
    %295 = vector.multi_reduction <add>, %294, %cst_106 [2] : vector<2x8x8xf32> to vector<2x8xf32>
    %296 = vector.shape_cast %295 : vector<2x8xf32> to vector<2x8x1xf32>
    %297 = tpu.reciprocal %296 {approx = true} : vector<2x8x1xf32> -> vector<2x8x1xf32>
    %298 = vector.broadcast %297 : vector<2x8x1xf32> to vector<2x8x8xf32>
    %299 = arith.mulf %294, %298 : vector<2x8x8xf32>
    %300 = vector.extract_strided_slice %229 {offsets = [0, 0, 24], sizes = [2, 8, 8], strides = [1, 1, 1]} : vector<2x8x32xf32> to vector<2x8x8xf32>
    "tpu.trace_start"() <{level = 10 : i32, message = "blm,bmd->bld"}> : () -> ()
    %cst_107 = arith.constant dense<0.000000e+00> : vector<2x8x8xf32>
    %301 = tpu.matmul %299, %300, %cst_107 {dimension_numbers = #tpu.dot_dimension_numbers<[2], [1], [1], [2], [0, 0, 0, 1, 1, 2], [0], [0]>} : vector<2x8x8xf32>, vector<2x8x8xf32>, vector<2x8x8xf32> -> vector<2x8x8xf32>
    "tpu.trace_stop"() : () -> ()
    %302 = tpu.concatenate %247, %265, %283, %301 in 2 : vector<2x8x8xf32>, vector<2x8x8xf32>, vector<2x8x8xf32>, vector<2x8x8xf32> -> vector<2x8x32xf32>
    %303 = vector.shape_cast %302 : vector<2x8x32xf32> to vector<16x32xf32>
    %304 = arith.truncf %303 : vector<16x32xf32> to vector<16x32xbf16>
    %c1_108 = arith.constant 1 : index
    %c0_109 = arith.constant 0 : index
    %c0_110 = arith.constant 0 : index
    %305 = vector.load %arg8[%c1_108, %c0_109, %c0_110] : memref<2x32x32xbf16, #tpu.memory_space<vmem>>, vector<1x32x32xbf16>
    %306 = vector.shape_cast %305 : vector<1x32x32xbf16> to vector<32x32xbf16>
    %cst_111 = arith.constant dense<0.000000e+00> : vector<16x32xf32>
    %307 = tpu.matmul %304, %306, %cst_111 {dimension_numbers = #tpu.dot_dimension_numbers<[1], [0], [0], [1], [0, 0, 1, 1], [], []>} : vector<16x32xbf16>, vector<32x32xbf16>, vector<16x32xf32> -> vector<16x32xf32>
    %c1_112 = arith.constant 1 : index
    %c0_113 = arith.constant 0 : index
    %c0_114 = arith.constant 0 : index
    %308 = vector.load %arg9[%c1_112, %c0_113, %c0_114] : memref<2x1x32xf32, #tpu.memory_space<vmem>>, vector<1x1x32xf32>
    %309 = vector.shape_cast %308 : vector<1x1x32xf32> to vector<1x32xf32>
    %310 = vector.broadcast %309 : vector<1x32xf32> to vector<16x32xf32>
    %311 = arith.addf %307, %310 : vector<16x32xf32>
    %312 = vector.shape_cast %311 : vector<16x32xf32> to vector<2x8x32xf32>
    %313 = arith.addf %188, %312 : vector<2x8x32xf32>
    %314 = vector.shape_cast %313 : vector<2x8x32xf32> to vector<16x32xf32>
    %c1_115 = arith.constant 1 : index
    %c0_116 = arith.constant 0 : index
    %c0_117 = arith.constant 0 : index
    %315 = vector.load %arg10[%c1_115, %c0_116, %c0_117] : memref<2x1x32xf32, #tpu.memory_space<vmem>>, vector<1x1x32xf32>
    %316 = vector.shape_cast %315 : vector<1x1x32xf32> to vector<1x32xf32>
    %c1_118 = arith.constant 1 : index
    %c0_119 = arith.constant 0 : index
    %c0_120 = arith.constant 0 : index
    %317 = vector.load %arg11[%c1_118, %c0_119, %c0_120] : memref<2x1x32xf32, #tpu.memory_space<vmem>>, vector<1x1x32xf32>
    %318 = vector.shape_cast %317 : vector<1x1x32xf32> to vector<1x32xf32>
    %cst_121 = arith.constant dense<0.000000e+00> : vector<16xf32>
    %319 = vector.multi_reduction <add>, %314, %cst_121 [1] : vector<16x32xf32> to vector<16xf32>
    %320 = vector.shape_cast %319 : vector<16xf32> to vector<16x1xf32>
    %cst_122 = arith.constant 3.200000e+01 : f32
    %321 = vector.broadcast %cst_122 : f32 to vector<16x1xf32>
    %322 = arith.divf %320, %321 : vector<16x1xf32>
    %323 = vector.broadcast %322 : vector<16x1xf32> to vector<16x32xf32>
    %324 = arith.subf %314, %323 : vector<16x32xf32>
    %325 = arith.mulf %324, %324 : vector<16x32xf32>
    %cst_123 = arith.constant dense<0.000000e+00> : vector<16xf32>
    %326 = vector.multi_reduction <add>, %325, %cst_123 [1] : vector<16x32xf32> to vector<16xf32>
    %327 = vector.shape_cast %326 : vector<16xf32> to vector<16x1xf32>
    %cst_124 = arith.constant 3.200000e+01 : f32
    %328 = vector.broadcast %cst_124 : f32 to vector<16x1xf32>
    %329 = arith.divf %327, %328 : vector<16x1xf32>
    %330 = vector.broadcast %322 : vector<16x1xf32> to vector<16x32xf32>
    %331 = arith.subf %314, %330 : vector<16x32xf32>
    %cst_125 = arith.constant 9.99999974E-6 : f32
    %332 = vector.broadcast %cst_125 : f32 to vector<16x1xf32>
    %333 = arith.addf %329, %332 : vector<16x1xf32>
    %334 = math.rsqrt %333 : vector<16x1xf32>
    %335 = vector.broadcast %334 : vector<16x1xf32> to vector<16x32xf32>
    %336 = arith.mulf %331, %335 : vector<16x32xf32>
    %337 = vector.broadcast %316 : vector<1x32xf32> to vector<16x32xf32>
    %338 = arith.mulf %336, %337 : vector<16x32xf32>
    %339 = vector.broadcast %318 : vector<1x32xf32> to vector<16x32xf32>
    %340 = arith.addf %338, %339 : vector<16x32xf32>
    %341 = arith.truncf %340 : vector<16x32xf32> to vector<16x32xbf16>
    %c1_126 = arith.constant 1 : index
    %c0_127 = arith.constant 0 : index
    %c0_128 = arith.constant 0 : index
    %342 = vector.load %arg12[%c1_126, %c0_127, %c0_128] : memref<2x32x128xbf16, #tpu.memory_space<vmem>>, vector<1x32x128xbf16>
    %343 = vector.shape_cast %342 : vector<1x32x128xbf16> to vector<32x128xbf16>
    %cst_129 = arith.constant dense<0.000000e+00> : vector<16x128xf32>
    %344 = tpu.matmul %341, %343, %cst_129 {dimension_numbers = #tpu.dot_dimension_numbers<[1], [0], [0], [1], [0, 0, 1, 1], [], []>} : vector<16x32xbf16>, vector<32x128xbf16>, vector<16x128xf32> -> vector<16x128xf32>
    %c1_130 = arith.constant 1 : index
    %c0_131 = arith.constant 0 : index
    %c0_132 = arith.constant 0 : index
    %345 = vector.load %arg13[%c1_130, %c0_131, %c0_132] : memref<2x1x128xf32, #tpu.memory_space<vmem>>, vector<1x1x128xf32>
    %346 = vector.shape_cast %345 : vector<1x1x128xf32> to vector<1x128xf32>
    %347 = vector.broadcast %346 : vector<1x128xf32> to vector<16x128xf32>
    %348 = arith.addf %344, %347 : vector<16x128xf32>
    %cst_133 = arith.constant 1.702000e+00 : f32
    %349 = vector.broadcast %cst_133 : f32 to vector<16x128xf32>
    %350 = arith.mulf %349, %348 : vector<16x128xf32>
    %351 = arith.negf %350 : vector<16x128xf32>
    %352 = math.exp %351 : vector<16x128xf32>
    %cst_134 = arith.constant 1.000000e+00 : f32
    %353 = vector.broadcast %cst_134 : f32 to vector<16x128xf32>
    %354 = arith.addf %353, %352 : vector<16x128xf32>
    %355 = arith.divf %353, %354 : vector<16x128xf32>
    %356 = arith.mulf %348, %355 : vector<16x128xf32>
    %357 = arith.truncf %356 : vector<16x128xf32> to vector<16x128xbf16>
    %c1_135 = arith.constant 1 : index
    %c0_136 = arith.constant 0 : index
    %c0_137 = arith.constant 0 : index
    %358 = vector.load %arg14[%c1_135, %c0_136, %c0_137] : memref<2x128x32xbf16, #tpu.memory_space<vmem>>, vector<1x128x32xbf16>
    %359 = vector.shape_cast %358 : vector<1x128x32xbf16> to vector<128x32xbf16>
    %cst_138 = arith.constant dense<0.000000e+00> : vector<16x32xf32>
    %360 = tpu.matmul %357, %359, %cst_138 {dimension_numbers = #tpu.dot_dimension_numbers<[1], [0], [0], [1], [0, 0, 1, 1], [], []>} : vector<16x128xbf16>, vector<128x32xbf16>, vector<16x32xf32> -> vector<16x32xf32>
    %c1_139 = arith.constant 1 : index
    %c0_140 = arith.constant 0 : index
    %c0_141 = arith.constant 0 : index
    %361 = vector.load %arg15[%c1_139, %c0_140, %c0_141] : memref<2x1x32xf32, #tpu.memory_space<vmem>>, vector<1x1x32xf32>
    %362 = vector.shape_cast %361 : vector<1x1x32xf32> to vector<1x32xf32>
    %363 = vector.broadcast %362 : vector<1x32xf32> to vector<16x32xf32>
    %364 = arith.addf %360, %363 : vector<16x32xf32>
    %365 = vector.shape_cast %364 : vector<16x32xf32> to vector<2x8x32xf32>
    %366 = arith.addf %313, %365 : vector<2x8x32xf32>
    %367 = vector.shape_cast %366 : vector<2x8x32xf32> to vector<16x32xf32>
    %c0_142 = arith.constant 0 : index
    %c0_143 = arith.constant 0 : index
    %368 = vector.load %arg20[%c0_142, %c0_143] : memref<16x32xf32, #tpu.memory_space<vmem>>, vector<16x32xf32>
    tpu.vector_store %arg20[%c0_142, %c0_143], %367 {strides = array<i32>} : memref<16x32xf32, #tpu.memory_space<vmem>>, vector<16x32xf32>,
    %c0_144 = arith.constant 0 : index
    %369 = memref.load %arg1[%c0_144] : memref<2xi32, #tpu.memory_space<smem>>
    %c0_i32 = arith.constant 0 : i32
    %370 = arith.addi %c0_i32, %369 : i32
    %371 = arith.index_cast %370 : i32 to index
    %c0_145 = arith.constant 0 : index
    %372 = vector.load %arg20[%371, %c0_145] : memref<16x32xf32, #tpu.memory_space<vmem>>, vector<1x32xf32>
    %c1_146 = arith.constant 1 : index
    %373 = memref.load %arg1[%c1_146] : memref<2xi32, #tpu.memory_space<smem>>
    %c8_i32 = arith.constant 8 : i32
    %374 = arith.addi %c8_i32, %373 : i32
    %375 = arith.index_cast %374 : i32 to index
    %c0_147 = arith.constant 0 : index
    %376 = vector.load %arg20[%375, %c0_147] : memref<16x32xf32, #tpu.memory_space<vmem>>, vector<1x32xf32>
    %377 = tpu.concatenate %372, %376 in 0 : vector<1x32xf32>, vector<1x32xf32> -> vector<2x32xf32>
    %c0_148 = arith.constant 0 : index
    %c0_149 = arith.constant 0 : index
    %378 = vector.load %arg16[%c0_148, %c0_149] : memref<1x32xf32, #tpu.memory_space<vmem>>, vector<1x32xf32>
    %c0_150 = arith.constant 0 : index
    %c0_151 = arith.constant 0 : index
    %379 = vector.load %arg17[%c0_150, %c0_151] : memref<1x32xf32, #tpu.memory_space<vmem>>, vector<1x32xf32>
    %cst_152 = arith.constant dense<0.000000e+00> : vector<2xf32>
    %380 = vector.multi_reduction <add>, %377, %cst_152 [1] : vector<2x32xf32> to vector<2xf32>
    %381 = vector.shape_cast %380 : vector<2xf32> to vector<2x1xf32>
    %cst_153 = arith.constant 3.200000e+01 : f32
    %382 = vector.broadcast %cst_153 : f32 to vector<2x1xf32>
    %383 = arith.divf %381, %382 : vector<2x1xf32>
    %384 = vector.broadcast %383 : vector<2x1xf32> to vector<2x32xf32>
    %385 = arith.subf %377, %384 : vector<2x32xf32>
    %386 = arith.mulf %385, %385 : vector<2x32xf32>
    %cst_154 = arith.constant dense<0.000000e+00> : vector<2xf32>
    %387 = vector.multi_reduction <add>, %386, %cst_154 [1] : vector<2x32xf32> to vector<2xf32>
    %388 = vector.shape_cast %387 : vector<2xf32> to vector<2x1xf32>
    %cst_155 = arith.constant 3.200000e+01 : f32
    %389 = vector.broadcast %cst_155 : f32 to vector<2x1xf32>
    %390 = arith.divf %388, %389 : vector<2x1xf32>
    %391 = vector.broadcast %383 : vector<2x1xf32> to vector<2x32xf32>
    %392 = arith.subf %377, %391 : vector<2x32xf32>
    %cst_156 = arith.constant 9.99999974E-6 : f32
    %393 = vector.broadcast %cst_156 : f32 to vector<2x1xf32>
    %394 = arith.addf %390, %393 : vector<2x1xf32>
    %395 = math.rsqrt %394 : vector<2x1xf32>
    %396 = vector.broadcast %395 : vector<2x1xf32> to vector<2x32xf32>
    %397 = arith.mulf %392, %396 : vector<2x32xf32>
    %398 = vector.broadcast %378 : vector<1x32xf32> to vector<2x32xf32>
    %399 = arith.mulf %397, %398 : vector<2x32xf32>
    %400 = vector.broadcast %379 : vector<1x32xf32> to vector<2x32xf32>
    %401 = arith.addf %399, %400 : vector<2x32xf32>
    %402 = arith.truncf %401 : vector<2x32xf32> to vector<2x32xbf16>
    %c0_157 = arith.constant 0 : index
    %c0_158 = arith.constant 0 : index
    %403 = vector.load %arg18[%c0_157, %c0_158] : memref<32x16xbf16, #tpu.memory_space<vmem>>, vector<32x16xbf16>
    %cst_159 = arith.constant dense<0.000000e+00> : vector<2x16xf32>
    %404 = tpu.matmul %402, %403, %cst_159 {dimension_numbers = #tpu.dot_dimension_numbers<[1], [0], [0], [1], [0, 0, 1, 1], [], []>} : vector<2x32xbf16>, vector<32x16xbf16>, vector<2x16xf32> -> vector<2x16xf32>
    %c0_160 = arith.constant 0 : index
    %c0_161 = arith.constant 0 : index
    %405 = vector.load %arg19[%c0_160, %c0_161] : memref<2x16xf32, #tpu.memory_space<vmem>>, vector<2x16xf32>
    tpu.vector_store %arg19[%c0_160, %c0_161], %404 {strides = array<i32>} : memref<2x16xf32, #tpu.memory_space<vmem>>, vector<2x16xf32>,
    return
  }
  func.func @transform_0(%arg0: i32, %arg1: memref<2xi32, #tpu.memory_space<smem>>) -> (i32, i32, i32) {
    %c0_i32 = arith.constant 0 : i32
    %c0_i32_0 = arith.constant 0 : i32
    %c0_i32_1 = arith.constant 0 : i32
    %c0_i32_2 = arith.constant 0 : i32
    return %c0_i32, %c0_i32_0, %c0_i32_1 : i32, i32, i32
  }
  func.func @transform_1(%arg0: i32, %arg1: memref<2xi32, #tpu.memory_space<smem>>) -> (i32, i32) {
    %c0_i32 = arith.constant 0 : i32
    %c0_i32_0 = arith.constant 0 : i32
    %c0_i32_1 = arith.constant 0 : i32
    return %c0_i32, %c0_i32_0 : i32, i32
  }
  func.func @transform_2(%arg0: i32, %arg1: memref<2xi32, #tpu.memory_space<smem>>) -> (i32, i32, i32) {
    %c0_i32 = arith.constant 0 : i32
    %c0_i32_0 = arith.constant 0 : i32
    %c0_i32_1 = arith.constant 0 : i32
    %c0_i32_2 = arith.constant 0 : i32
    return %c0_i32, %c0_i32_0, %c0_i32_1 : i32, i32, i32
  }
  func.func @transform_3(%arg0: i32, %arg1: memref<2xi32, #tpu.memory_space<smem>>) -> (i32, i32, i32) {
    %c0_i32 = arith.constant 0 : i32
    %c0_i32_0 = arith.constant 0 : i32
    %c0_i32_1 = arith.constant 0 : i32
    %c0_i32_2 = arith.constant 0 : i32
    return %c0_i32, %c0_i32_0, %c0_i32_1 : i32, i32, i32
  }
  func.func @transform_4(%arg0: i32, %arg1: memref<2xi32, #tpu.memory_space<smem>>) -> (i32, i32, i32) {
    %c0_i32 = arith.constant 0 : i32
    %c0_i32_0 = arith.constant 0 : i32
    %c0_i32_1 = arith.constant 0 : i32
    %c0_i32_2 = arith.constant 0 : i32
    return %c0_i32, %c0_i32_0, %c0_i32_1 : i32, i32, i32
  }
  func.func @transform_5(%arg0: i32, %arg1: memref<2xi32, #tpu.memory_space<smem>>) -> (i32, i32, i32) {
    %c0_i32 = arith.constant 0 : i32
    %c0_i32_0 = arith.constant 0 : i32
    %c0_i32_1 = arith.constant 0 : i32
    %c0_i32_2 = arith.constant 0 : i32
    return %c0_i32, %c0_i32_0, %c0_i32_1 : i32, i32, i32
  }
  func.func @transform_6(%arg0: i32, %arg1: memref<2xi32, #tpu.memory_space<smem>>) -> (i32, i32, i32) {
    %c0_i32 = arith.constant 0 : i32
    %c0_i32_0 = arith.constant 0 : i32
    %c0_i32_1 = arith.constant 0 : i32
    %c0_i32_2 = arith.constant 0 : i32
    return %c0_i32, %c0_i32_0, %c0_i32_1 : i32, i32, i32
  }
  func.func @transform_7(%arg0: i32, %arg1: memref<2xi32, #tpu.memory_space<smem>>) -> (i32, i32, i32) {
    %c0_i32 = arith.constant 0 : i32
    %c0_i32_0 = arith.constant 0 : i32
    %c0_i32_1 = arith.constant 0 : i32
    %c0_i32_2 = arith.constant 0 : i32
    return %c0_i32, %c0_i32_0, %c0_i32_1 : i32, i32, i32
  }
  func.func @transform_8(%arg0: i32, %arg1: memref<2xi32, #tpu.memory_space<smem>>) -> (i32, i32, i32) {
    %c0_i32 = arith.constant 0 : i32
    %c0_i32_0 = arith.constant 0 : i32
    %c0_i32_1 = arith.constant 0 : i32
    %c0_i32_2 = arith.constant 0 : i32
    return %c0_i32, %c0_i32_0, %c0_i32_1 : i32, i32, i32
  }
  func.func @transform_9(%arg0: i32, %arg1: memref<2xi32, #tpu.memory_space<smem>>) -> (i32, i32, i32) {
    %c0_i32 = arith.constant 0 : i32
    %c0_i32_0 = arith.constant 0 : i32
    %c0_i32_1 = arith.constant 0 : i32
    %c0_i32_2 = arith.constant 0 : i32
    return %c0_i32, %c0_i32_0, %c0_i32_1 : i32, i32, i32
  }
  func.func @transform_10(%arg0: i32, %arg1: memref<2xi32, #tpu.memory_space<smem>>) -> (i32, i32, i32) {
    %c0_i32 = arith.constant 0 : i32
    %c0_i32_0 = arith.constant 0 : i32
    %c0_i32_1 = arith.constant 0 : i32
    %c0_i32_2 = arith.constant 0 : i32
    return %c0_i32, %c0_i32_0, %c0_i32_1 : i32, i32, i32
  }
  func.func @transform_11(%arg0: i32, %arg1: memref<2xi32, #tpu.memory_space<smem>>) -> (i32, i32, i32) {
    %c0_i32 = arith.constant 0 : i32
    %c0_i32_0 = arith.constant 0 : i32
    %c0_i32_1 = arith.constant 0 : i32
    %c0_i32_2 = arith.constant 0 : i32
    return %c0_i32, %c0_i32_0, %c0_i32_1 : i32, i32, i32
  }
  func.func @transform_12(%arg0: i32, %arg1: memref<2xi32, #tpu.memory_space<smem>>) -> (i32, i32, i32) {
    %c0_i32 = arith.constant 0 : i32
    %c0_i32_0 = arith.constant 0 : i32
    %c0_i32_1 = arith.constant 0 : i32
    %c0_i32_2 = arith.constant 0 : i32
    return %c0_i32, %c0_i32_0, %c0_i32_1 : i32, i32, i32
  }
  func.func @transform_13(%arg0: i32, %arg1: memref<2xi32, #tpu.memory_space<smem>>) -> (i32, i32, i32) {
    %c0_i32 = arith.constant 0 : i32
    %c0_i32_0 = arith.constant 0 : i32
    %c0_i32_1 = arith.constant 0 : i32
    %c0_i32_2 = arith.constant 0 : i32
    return %c0_i32, %c0_i32_0, %c0_i32_1 : i32, i32, i32
  }
  func.func @transform_14(%arg0: i32, %arg1: memref<2xi32, #tpu.memory_space<smem>>) -> (i32, i32) {
    %c0_i32 = arith.constant 0 : i32
    %c0_i32_0 = arith.constant 0 : i32
    %c0_i32_1 = arith.constant 0 : i32
    return %c0_i32, %c0_i32_0 : i32, i32
  }
  func.func @transform_15(%arg0: i32, %arg1: memref<2xi32, #tpu.memory_space<smem>>) -> (i32, i32) {
    %c0_i32 = arith.constant 0 : i32
    %c0_i32_0 = arith.constant 0 : i32
    %c0_i32_1 = arith.constant 0 : i32
    return %c0_i32, %c0_i32_0 : i32, i32
  }
  func.func @transform_16(%arg0: i32, %arg1: memref<2xi32, #tpu.memory_space<smem>>) -> (i32, i32) {
    %c0_i32 = arith.constant 0 : i32
    %c0_i32_0 = arith.constant 0 : i32
    %c0_i32_1 = arith.constant 0 : i32
    return %c0_i32, %c0_i32_0 : i32, i32
  }
  func.func @transform_17(%arg0: i32, %arg1: memref<2xi32, #tpu.memory_space<smem>>) -> (i32, i32) {
    %c0_i32 = arith.constant 0 : i32
    %c0_i32_0 = arith.constant 0 : i32
    %c0_i32_1 = arith.constant 0 : i32
    return %c0_i32, %c0_i32_0 : i32, i32
  }
}

</mosaic_0001>

<bundles_post_ra>
// kernel: tpu_custom_call.1
= control target key start
LH: loop header
LB: loop body
LE: loop exit
PB: predicated region body
PF: predicated region fallthrough
CT: control target
= control target key end

     0   :  { %s2489_s30 = smov [#allocation4]   ;;  %s3077_s0 = inlined_call_operand.vmem [shape: s32[2], index: 0, kind: input, shape index: {}]   ;;  %s3078_s1 = inlined_call_operand.vmem [shape: f32[2,8,32], index: 1, kind: input, shape index: {}]   ;;  %s3079_s2 = inlined_call_operand.vmem [shape: f32[8,32], index: 2, kind: input, shape index: {}]   ;;  %s3080_s3 = inlined_call_operand.vmem [shape: f32[2,1,32], index: 3, kind: input, shape index: {}]   ;;  %s3081_s4 = inlined_call_operand.vmem [shape: f32[2,1,32], index: 4, kind: input, shape index: {}]   ;;  %s3082_s5 = inlined_call_operand.vmem [shape: bf16[2,32,96], index: 5, kind: input, shape index: {}]   ;;  %s3083_s6 = inlined_call_operand.vmem [shape: f32[2,1,96], index: 6, kind: input, shape index: {}]   ;;  %s3084_s7 = inlined_call_operand.vmem [shape: bf16[2,32,32], index: 7, kind: input, shape index: {}]   ;;  %s3085_s8 = inlined_call_operand.vmem [shape: f32[2,1,32], index: 8, kind: input, shape index: {}]   ;;  %s3086_s9 = inlined_call_operand.vmem [shape: f32[2,1,32], index: 9, kind: input, shape index: {}]   ;;  %s3087_s10 = inlined_call_operand.vmem [shape: f32[2,1,32], index: 10, kind: input, shape index: {}]   ;;  %s3088_s11 = inlined_call_operand.vmem [shape: bf16[2,32,128], index: 11, kind: input, shape index: {}]   ;;  %s3089_s12 = inlined_call_operand.vmem [shape: f32[2,1,128], index: 12, kind: input, shape index: {}]   ;;  %s3090_s13 = inlined_call_operand.vmem [shape: bf16[2,128,32], index: 13, kind: input, shape index: {}]   ;;  %s3091_s14 = inlined_call_operand.vmem [shape: f32[2,1,32], index: 14, kind: input, shape index: {}]   ;;  %s3092_s15 = inlined_call_operand.vmem [shape: f32[1,32], index: 15, kind: input, shape index: {}]   ;;  %s3093_s16 = inlined_call_operand.vmem [shape: f32[1,32], index: 16, kind: input, shape index: {}]   ;;  %s3094_s17 = inlined_call_operand.vmem [shape: bf16[32,16], index: 17, kind: input, shape index: {}]   ;;  %s3095_s18 = inlined_call_operand.hbm [shape: f32[2,16], index: 18, kind: output, shape index: {}]  }
   0x1   :  { %3112 = sst [smem:[#allocation9_spill]] %s3077_s0 }
   0x2   :  { %3113 = sst [smem:[#allocation10_spill]] %s3078_s1 }
   0x3   :  { %3114 = sst [smem:[#allocation11_spill]] %s3079_s2 }
   0x4   :  { %3115 = sst [smem:[#allocation12_spill]] %s3089_s12 }
   0x5   :  { %s3116_s29 = sld [smem:[#allocation9_spill]] }
   0xb   :  { %s24_s12 = sshll.u32 %s3116_s29, 4  ;;  %s25_s12 = int_to_ptr.vmem [resolvable:$true] %s24_s12 }
   0xc   :  { %27 = dma.vmem_to_smem %s25_s12, 16, %s2489_s30, [#allocation3] }
   0xd   :  { %2485 = dma.done.wait [#allocation3], 16 }
   0xe   :  { %2486 = vsyncadd [#allocation3], 4294967280 }
   0xf   :  { %30 = sfence }
  0x10   :  { %s3117_s1 = sld [smem:[#allocation10_spill]]  ;;  %vm80_vm0 = vcmask 261120  }
  0x11   :  { %s3118_s22 = sld [smem:[#allocation11_spill]] }
  0x16   :  { %v67_v0 = vld [vmem:[%s3117_s1] sm:$0xff]  ;;  %v68_v2 = vld [vmem:[%s3117_s1 + $0x8] sm:$0xff] }
  0x17   :  { %v69_v1 = vld [vmem:[%s3118_s22] sm:$0xff] }
  0x18   :  { %v2614_v3 = vadd.f32 %v69_v1, %v67_v0  ;;  %v2618_v5 = vadd.f32 %v69_v1, %v68_v2 }
  0x1a   :  { %v81_v4 = vsel %vm80_vm0, %v2614_v3, 0.0 }
  0x1b   :  { %82 = vadd.xlane.f32.xlu0 %v81_v4 }
  0x1c   :  { %31 = vsyncpa [#allocation6], 0  ;;  %v84_v6 = vsel %vm80_vm0, %v2618_v5, 0.0  ;;  %v2490_v7 = vmov 32.0   ;;  %v2234_v24 = vld [vmem:[%s3082_s5 + $0x8] sm:$0xff]  ;;  %v2233_v26 = vld [vmem:[%s3082_s5] sm:$0xff] }
  0x1d   :  { %2349 = vrcp.f32 %v2490_v7  ;;  %172 = vmatpush.bf16.msra.mxu0 %v2234_v24  ;;  %v2331_v45 = vld [vmem:[%s3080_s3] ss:$0 sm:$0xff]  ;;  %s2491_s1 = smov 96   ;;  %s2492_s20 = smov 88   ;;  %vm185_vm8 = vcmask 64512   ;;  %vm729_vm10 = vcmask 130048  }
  0x1e   :  { %v2332_v50 = vld [vmem:[%s3081_s4] ss:$0 sm:$0xff]  ;;  %s2493_s21 = smov 120   ;;  %s3108_s22 = smov 112   ;;  %vm732_vm11 = vcmask 195584  }
  0x1f   :  { %v2333_v55 = vld [vmem:[%s3083_s6] ss:$0 sm:$0xff]  ;;  %s3104_s2 = smov 104   ;;  %s2496_s23 = smov 80  }
  0x20   :  { %s3106_s12 = smov 72   ;;  %s2499_s24 = smov 64  }
  0x21   :  { %173 = vmatpush.bf16.msra.mxu0 %v2233_v26  ;;  %s3110_s25 = smov 56   ;;  %s3100_s26 = smov 48  }
  0x22   :  { %s3098_s27 = smov 40   ;;  %s3103_s28 = smov 8  }
  0x23   :  { %85 = vadd.xlane.f32.xlu0 %v84_v6  ;;  %v2350_v8 = vpop.eup %2349  ;;  %s3102_s29 = smov 16   ;;  %s3101_s30 = smov 24  }
  0x24   :  { %v88_v9 = vmul.f32 32.0, %v2350_v8  ;;  %vm92_vm1 = vweird.f32 %v2350_v8 }
  0x26   :  { %v89_v10 = vsub.f32 1.0, %v88_v9 }
  0x28   :  { %v90_v11 = vmul.f32 %v2350_v8, %v89_v10 }
  0x2a   :  { %v91_v12 = vadd.f32 %v2350_v8, %v90_v11 }
  0x2c   :  { %v2622_v13 = vsel %vm92_vm1, %v2350_v8, %v91_v12 }
  0x8e   :  { %v83_v14 = vpop.xlane.xlu0 %82 }
  0x8f   :  { %v94_v15 = vmul.f32 %v2622_v13, %v83_v14 }
  0x91   :  { %v96_v16 = vsub.f32 %v2614_v3, %v94_v15  ;;  %v72_v15 = vlaneseq }
  0x93   :  { %v98_v17 = vmul.f32 %v96_v16, %v96_v16 }
  0x95   :  { %v100_v18 = vsel %vm80_vm0, %v98_v17, 0.0  ;;  %v75_v17 = vand.u32 127, %v72_v15 }
  0x96   :  { %101 = vadd.xlane.f32.xlu1 %v100_v18  ;;  %v86_v19 = vpop.xlane.xlu0 %85  ;;  %v2498_v18 = vmov -1e+09  }
  0x97   :  { %v95_v20 = vmul.f32 %v2622_v13, %v86_v19 }
  0x99   :  { %v97_v21 = vsub.f32 %v2618_v5, %v95_v20 }
  0x9b   :  { %v99_v22 = vmul.f32 %v97_v21, %v97_v21 }
  0x9d   :  { %v103_v23 = vsel %vm80_vm0, %v99_v22, 0.0 }
  0x9e   :  { %104 = vadd.xlane.f32.xlu1 %v103_v23 }
 0x109   :  { %v102_v25 = vpop.xlane.xlu1 %101 }
 0x10a   :  { %v106_v27 = vmul.f32 %v102_v25, %v2622_v13 }
 0x10c   :  { %v108_v28 = vadd.f32 1e-05, %v106_v27 }
 0x10e   :  { %2351 = vrsqrt.f32 %v108_v28  ;;  %vm116_vm3 = vweird.f32 %v108_v28 }
 0x111   :  { %v105_v29 = vpop.xlane.xlu1 %104 }
 0x112   :  { %v107_v30 = vmul.f32 %v105_v29, %v2622_v13 }
 0x114   :  { %v2352_v31 = vpop.eup %2351  ;;  %v109_v32 = vadd.f32 1e-05, %v107_v30 }
 0x115   :  { %v111_v33 = vmul.f32 %v2352_v31, %v108_v28  ;;  %vm117_vm2 = vweird.f32 %v2352_v31 }
 0x116   :  { %2353 = vrsqrt.f32 %v109_v32  ;;  %vm118_vm4 = vmor %vm116_vm3, %vm117_vm2  ;;  %vm126_vm6 = vweird.f32 %v109_v32 }
 0x117   :  { %v112_v34 = vmul.f32 %v2352_v31, %v111_v33 }
 0x119   :  { %v113_v35 = vmul.f32 0.5, %v112_v34 }
 0x11b   :  { %v114_v36 = vsub.f32 1.5, %v113_v35 }
 0x11c   :  { %v2354_v37 = vpop.eup %2353 }
 0x11d   :  { %v115_v38 = vmul.f32 %v2352_v31, %v114_v36  ;;  %v121_v39 = vmul.f32 %v2354_v37, %v109_v32  ;;  %vm127_vm5 = vweird.f32 %v2354_v37 }
 0x11e   :  { %vm128_vm7 = vmor %vm126_vm6, %vm127_vm5 }
 0x11f   :  { %v122_v40 = vmul.f32 %v2354_v37, %v121_v39  ;;  %v119_v41 = vsel %vm118_vm4, %v2352_v31, %v115_v38 }
 0x120   :  { %v130_v44 = vmul.f32 %v119_v41, %v96_v16  ;;  %v73_v16 = vshrl.u32 %v72_v15, 7 }
 0x121   :  { %v123_v42 = vmul.f32 0.5, %v122_v40 }
 0x122   :  { %v135_v49 = vmul.f32 %v2331_v45, %v130_v44  ;;  %vm76_vm9 = vcmp.le.s32.totalorder %v75_v17, %v73_v16 }
 0x123   :  { %v124_v43 = vsub.f32 1.5, %v123_v42  ;;  %v2692_v19 = vsel %vm76_vm9, 0.0, %v2498_v18 }
 0x124   :  { %v140_v52 = vadd.f32 %v2332_v50, %v135_v49 }
 0x125   :  { %v125_v46 = vmul.f32 %v2354_v37, %v124_v43 }
 0x127   :  { %v129_v47 = vsel %vm128_vm7, %v2354_v37, %v125_v46 }
 0x128   :  { %v131_v48 = vmul.f32 %v129_v47, %v97_v21 }
 0x12a   :  { %v136_v51 = vmul.f32 %v2331_v45, %v131_v48 }
 0x12c   :  { %v141_v53 = vadd.f32 %v2332_v50, %v136_v51 }
 0x12e   :  { %v142_v54 = vpack.c.bf16 %v141_v53, %v140_v52 }
 0x130   :  { %2024 = vmatmul.msk.bf16.vlgmr.msra.gmra.mxu0 %vm80_vm0, %v142_v54 }
 0x1ad   :  { %v175_v56 = vpop.f32.mrf.mxu0 }
 0x1ae   :  { %v2648_v57 = vadd.f32 %v2333_v55, %v175_v56 }
 0x1b0   :  { %183 = vrot.lane.b32.xlu2 %v2648_v57, %s2491_s1  ;;  %v180_v61 = vmul.f32 0.35355338, %v2648_v57 }
 0x1b5   :  { %v177_v58 = vpop.f32.mrf.mxu0 }
 0x1b6   :  { %v2652_v59 = vadd.f32 %v2333_v55, %v177_v58 }
 0x1b8   :  { %343 = vrot.lane.b32.xlu0 %v2652_v59, %s2492_s20  ;;  %212 = vrot.lane.b32.xlu2 %v2652_v59, %s2491_s1  ;;  %v181_v60 = vmul.f32 0.35355338, %v2652_v59  ;;  %v2281_v44 = vpack.i.bf16 %v2652_v59, %v2648_v57 }
 0x1ba   :  { %341 = vrot.lane.b32.xlu1 %v181_v60, %s2493_s21 }
 0x1c0   :  { %315 = vrot.lane.b32.xlu2 %v2648_v57, %s2492_s20  ;;  %443 = vrot.lane.b32.xlu0 %v180_v61, %s3108_s22 }
 0x1c2   :  { %573 = vrot.lane.b32.xlu1 %v180_v61, %s3104_s2 }
 0x1c8   :  { %445 = vrot.lane.b32.xlu2 %v2648_v57, %s2496_s23  ;;  %473 = vrot.lane.b32.xlu0 %v2652_v59, %s2496_s23 }
 0x1ca   :  { %603 = vrot.lane.b32.xlu1 %v2652_v59, %s3106_s12 }
 0x1d0   :  { %601 = vrot.lane.b32.xlu0 %v181_v60, %s3104_s2  ;;  %313 = vrot.lane.b32.xlu2 %v180_v61, %s2493_s21 }
 0x1d8   :  { %575 = vrot.lane.b32.xlu2 %v2648_v57, %s3106_s12 }
 0x1e0   :  { %471 = vrot.lane.b32.xlu2 %v181_v60, %s3108_s22  ;;  %s1917_s22 = sld [smem:[#allocation4]] }
 0x20a   :  { %v184_v62 = vpop.permute.xlu2 %183 }
 0x20b   :  { %2025 = vmatpush.xpose.msk.msra.mxu2 %vm185_vm8, %v184_v62 }
 0x20e   :  { %2026 = vmatmul.msk.f32.vlgmr.msra.gmra.mxu2 %vm185_vm8, %v180_v61 }
 0x212   :  { %v213_v63 = vpop.permute.xlu2 %212 }
 0x213   :  { %2027 = vmatpush.xpose.msk.msrb.mxu2 %vm185_vm8, %v213_v63 }
 0x216   :  { %2028 = vmatmul.msk.f32.vlgmr.msrb.gmra.mxu2 %vm185_vm8, %v181_v60 }
 0x21a   :  { %v316_v0 = vpop.permute.xlu2 %315 }
 0x21b   :  { %2031 = vmatpush.xpose.msk.msra.mxu1 %vm185_vm8, %v316_v0 }
 0x222   :  { %v446_v1 = vpop.permute.xlu2 %445 }
 0x22a   :  { %v344_v2 = vpop.permute.xlu0 %343  ;;  %v314_v4 = vpop.permute.xlu2 %313 }
 0x22b   :  { %2032 = vmatmul.msk.f32.vlgmr.msra.gmra.mxu1 %vm185_vm8, %v314_v4  ;;  %2033 = vmatpush.xpose.msk.msra.mxu2 %vm185_vm8, %v344_v2 }
 0x22c   :  { %v342_v6 = vpop.permute.xlu1 %341 }
 0x22e   :  { %2034 = vmatmul.msk.f32.vlgmr.msra.gmra.mxu2 %vm185_vm8, %v342_v6 }
 0x22f   :  { %2037 = vmatpush.xpose.msk.msrb.mxu2 %vm185_vm8, %v446_v1 }
 0x232   :  { %v444_v7 = vpop.permute.xlu0 %443  ;;  %v576_v8 = vpop.permute.xlu2 %575 }
 0x233   :  { %2043 = vmatpush.xpose.msk.msra.mxu2 %vm185_vm8, %v576_v8 }
 0x234   :  { %v574_v9 = vpop.permute.xlu1 %573 }
 0x236   :  { %2038 = vmatmul.msk.f32.vlgmr.msrb.gmra.mxu2 %vm185_vm8, %v444_v7 }
 0x23a   :  { %v474_v10 = vpop.permute.xlu0 %473  ;;  %v472_v12 = vpop.permute.xlu2 %471 }
 0x23b   :  { %2039 = vmatpush.xpose.msk.msrb.mxu0 %vm185_vm8, %v474_v10 }
 0x23c   :  { %v604_v11 = vpop.permute.xlu1 %603 }
 0x23e   :  { %2040 = vmatmul.msk.f32.vlgmr.msrb.gmra.mxu0 %vm185_vm8, %v472_v12  ;;  %2044 = vmatmul.msk.f32.vlgmr.msra.gmra.mxu2 %vm185_vm8, %v574_v9 }
 0x23f   :  { %2045 = vmatpush.xpose.msk.msra.mxu0 %vm185_vm8, %v604_v11 }
 0x242   :  { %v602_v14 = vpop.permute.xlu0 %601 }
 0x246   :  { %2046 = vmatmul.msk.f32.vlgmr.msra.gmra.mxu0 %vm185_vm8, %v602_v14 }
 0x291   :  { %v208_v20 = vpop.f32.mrf.mxu2 }
 0x292   :  { %v209_v21 = vadd.f32 %v208_v20, %v2692_v19 }
 0x294   :  { %v239_v22 = vsel %vm185_vm8, %v209_v21, -inf }
 0x295   :  { %240 = vmax.xlane.f32.xlu2 %v239_v22 }
 0x299   :  { %v236_v23 = vpop.f32.mrf.mxu2 }
 0x29a   :  { %v237_v24 = vadd.f32 %v236_v23, %v2692_v19 }
 0x29c   :  { %v242_v25 = vsel %vm185_vm8, %v237_v24, -inf }
 0x29d   :  { %243 = vmax.xlane.f32.xlu1 %v242_v25 }
 0x2a8   :  { %v338_v26 = vpop.f32.mrf.mxu1 }
 0x2a9   :  { %v339_v27 = vadd.f32 %v338_v26, %v2692_v19 }
 0x2ab   :  { %v369_v28 = vsel %vm185_vm8, %v339_v27, -inf }
 0x2ac   :  { %370 = vmax.xlane.f32.xlu0 %v369_v28 }
 0x2b1   :  { %v366_v29 = vpop.f32.mrf.mxu2 }
 0x2b2   :  { %v367_v30 = vadd.f32 %v366_v29, %v2692_v19 }
 0x2b4   :  { %v372_v31 = vsel %vm185_vm8, %v367_v30, -inf }
 0x2b5   :  { %373 = vmax.xlane.f32.xlu2 %v372_v31 }
 0x2b9   :  { %v468_v32 = vpop.f32.mrf.mxu2 }
 0x2ba   :  { %v469_v42 = vadd.f32 %v468_v32, %v2692_v19 }
 0x2bb   :  { %v496_v33 = vpop.f32.mrf.mxu0 }
 0x2bc   :  { %v497_v34 = vadd.f32 %v496_v33, %v2692_v19  ;;  %v499_v43 = vsel %vm185_vm8, %v469_v42, -inf }
 0x2be   :  { %v502_v35 = vsel %vm185_vm8, %v497_v34, -inf }
 0x2bf   :  { %503 = vmax.xlane.f32.xlu0 %v502_v35 }
 0x2c1   :  { %v598_v36 = vpop.f32.mrf.mxu2 }
 0x2c2   :  { %v599_v37 = vadd.f32 %v598_v36, %v2692_v19 }
 0x2c3   :  { %v626_v38 = vpop.f32.mrf.mxu0 }
 0x2c4   :  { %v2706_v39 = vadd.f32 %v626_v38, %v2692_v19  ;;  %v629_v40 = vsel %vm185_vm8, %v599_v37, -inf }
 0x2c5   :  { %630 = vmax.xlane.f32.xlu2 %v629_v40 }
 0x2c6   :  { %v632_v41 = vsel %vm185_vm8, %v2706_v39, -inf }
 0x2c7   :  { %633 = vmax.xlane.f32.xlu1 %v632_v41 }
 0x2cf   :  { %500 = vmax.xlane.f32.xlu1 %v499_v43 }
 0x2e8   :  { %2282 = vrot.lane.b32.xlu1 %v2281_v44, %s2499_s24 }
 0x308   :  { %v241_v50 = vpop.xlane.xlu2 %240 }
 0x309   :  { %v245_v53 = vsub.f32 %v209_v21, %v241_v50 }
 0x30b   :  { %v247_v55 = vmul.f32 1.442695, %v245_v53 }
 0x310   :  { %v244_v45 = vpop.xlane.xlu1 %243 }
 0x311   :  { %v246_v46 = vsub.f32 %v237_v24, %v244_v45 }
 0x313   :  { %v249_v47 = vmul.f32 1.442695, %v246_v46 }
 0x315   :  { %2355 = vpow2.f32 %v249_v47 }
 0x31b   :  { %v2716_v48 = vpop.eup %2355 }
 0x31c   :  { %v254_v49 = vsel %vm185_vm8, %v2716_v48, 0.0 }
 0x31d   :  { %255 = vadd.xlane.f32.xlu2 %v254_v49 }
 0x31f   :  { %v371_v51 = vpop.xlane.xlu0 %370 }
 0x320   :  { %v375_v52 = vsub.f32 %v339_v27, %v371_v51 }
 0x322   :  { %v377_v54 = vmul.f32 1.442695, %v375_v52 }
 0x324   :  { %2357 = vpow2.f32 %v377_v54 }
 0x325   :  { %2359 = vpow2.f32 %v247_v55 }
 0x328   :  { %v374_v56 = vpop.xlane.xlu2 %373 }
 0x329   :  { %v376_v58 = vsub.f32 %v367_v30, %v374_v56 }
 0x32a   :  { %v2720_v60 = vpop.eup %2357 }
 0x32b   :  { %v379_v61 = vmul.f32 1.442695, %v376_v58  ;;  %v381_v62 = vsel %vm185_vm8, %v2720_v60, 0.0  ;;  %v2360_v63 = vpop.eup %2359 }
 0x32c   :  { %382 = vadd.xlane.f32.xlu0 %v381_v62  ;;  %v251_v4 = vsel %vm185_vm8, %v2360_v63, 0.0 }
 0x32d   :  { %2361 = vpow2.f32 %v379_v61 }
 0x332   :  { %v504_v0 = vpop.xlane.xlu0 %503 }
 0x333   :  { %v2362_v1 = vpop.eup %2361  ;;  %v506_v2 = vsub.f32 %v497_v34, %v504_v0 }
 0x334   :  { %252 = vadd.xlane.f32.xlu0 %v251_v4  ;;  %v384_v6 = vsel %vm185_vm8, %v2362_v1, 0.0 }
 0x335   :  { %v509_v7 = vmul.f32 1.442695, %v506_v2  ;;  %385 = vadd.xlane.f32.xlu2 %v384_v6 }
 0x337   :  { %2363 = vpow2.f32 %v509_v7 }
 0x338   :  { %v631_v8 = vpop.xlane.xlu2 %630 }
 0x339   :  { %v635_v9 = vsub.f32 %v599_v37, %v631_v8 }
 0x33a   :  { %v634_v10 = vpop.xlane.xlu1 %633 }
 0x33b   :  { %v637_v11 = vmul.f32 1.442695, %v635_v9  ;;  %v636_v26 = vsub.f32 %v2706_v39, %v634_v10 }
 0x33d   :  { %v2726_v12 = vpop.eup %2363  ;;  %2365 = vpow2.f32 %v637_v11  ;;  %v639_v27 = vmul.f32 1.442695, %v636_v26  ;;  %v2236_v11 = vld [vmem:[%s3084_s7 + $0x8] sm:$0xff] }
 0x33e   :  { %v514_v14 = vsel %vm185_vm8, %v2726_v12, 0.0  ;;  %765 = vmatpush.bf16.msrb.mxu2 %v2236_v11 }
 0x33f   :  { %515 = vadd.xlane.f32.xlu0 %v514_v14 }
 0x342   :  { %v501_v15 = vpop.xlane.xlu1 %500 }
 0x343   :  { %v2730_v16 = vpop.eup %2365  ;;  %v505_v17 = vsub.f32 %v469_v42, %v501_v15 }
 0x344   :  { %v641_v18 = vsel %vm185_vm8, %v2730_v16, 0.0 }
 0x345   :  { %v507_v20 = vmul.f32 1.442695, %v505_v17  ;;  %642 = vadd.xlane.f32.xlu1 %v641_v18 }
 0x347   :  { %2367 = vpow2.f32 %v507_v20 }
 0x348   :  { %2369 = vpow2.f32 %v639_v27 }
 0x34d   :  { %v2368_v21 = vpop.eup %2367  ;;  %2287 = vrot.lane.b32.xlu2 %v2281_v44, %s3110_s25  ;;  %s3119_s25 = sld [smem:[#allocation12_spill]] }
 0x34e   :  { %v511_v22 = vsel %vm185_vm8, %v2368_v21, 0.0  ;;  %v2370_v28 = vpop.eup %2369 }
 0x34f   :  { %512 = vadd.xlane.f32.xlu0 %v511_v22  ;;  %v644_v29 = vsel %vm185_vm8, %v2370_v28, 0.0 }
 0x35a   :  { %v2283_v23 = vpop.permute.xlu1 %2282 }
 0x35b   :  { %v2284_v24 = vunpack.i.l.bf16 %v2283_v23  ;;  %v2285_v25 = vunpack.i.h.bf16 %v2283_v23 }
 0x35d   :  { %282 = vmatpush.msra.mxu3 %v2284_v24 }
 0x35f   :  { %308 = vmatpush.msrb.mxu3 %v2285_v25 }
 0x363   :  { %2292 = vrot.lane.b32.xlu0 %v2281_v44, %s3100_s26 }
 0x36b   :  { %651 = vrot.lane.b32.xlu0 %v2648_v57, %s3098_s27 }
 0x373   :  { %677 = vrot.lane.b32.xlu0 %v2652_v59, %s3098_s27  ;;  %s3128_s27 = smov 24  }
 0x376   :  { %645 = vadd.xlane.f32.xlu2 %v644_v29 }
 0x390   :  { %v256_v31 = vpop.xlane.xlu2 %255 }
 0x39f   :  { %v383_v30 = vpop.xlane.xlu0 %382 }
 0x3a7   :  { %v253_v32 = vpop.xlane.xlu0 %252 }
 0x3a8   :  { %2371 = vrcp.f32 %v253_v32  ;;  %v386_v33 = vpop.xlane.xlu2 %385 }
 0x3a9   :  { %2373 = vrcp.f32 %v386_v33 }
 0x3aa   :  { %2375 = vrcp.f32 %v256_v31  ;;  %v2334_v31 = vld [vmem:[%s3085_s8] ss:$0 sm:$0xff] }
 0x3ab   :  { %2377 = vrcp.f32 %v383_v30 }
 0x3ae   :  { %v2372_v34 = vpop.eup %2371 }
 0x3af   :  { %v2374_v35 = vpop.eup %2373  ;;  %v259_v36 = vmul.f32 %v2372_v34, %v2360_v63 }
 0x3b0   :  { %v2288_v37 = vpop.permute.xlu2 %2287  ;;  %v390_v39 = vmul.f32 %v2374_v35, %v2362_v1  ;;  %v2376_v59 = vpop.eup %2375 }
 0x3b1   :  { %v2289_v57 = vunpack.i.l.bf16 %v2288_v37  ;;  %2029 = vmatmul.msk.f32.vlgmr.msra.gmra.mxu3 %vm185_vm8, %v259_v36  ;;  %v2290_v38 = vunpack.i.h.bf16 %v2288_v37  ;;  %v260_v40 = vmul.f32 %v2376_v59, %v2716_v48  ;;  %v2378_v41 = vpop.eup %2377 }
 0x3b2   :  { %v389_v42 = vmul.f32 %v2378_v41, %v2720_v60  ;;  %v516_v43 = vpop.xlane.xlu0 %515 }
 0x3b3   :  { %412 = vmatpush.msra.mxu3 %v2289_v57  ;;  %438 = vmatpush.msrb.mxu1 %v2290_v38  ;;  %2379 = vrcp.f32 %v516_v43 }
 0x3b4   :  { %2036 = vmatmul.msk.f32.vlgmr.msrb.gmra.mxu1 %vm185_vm8, %v390_v39 }
 0x3b8   :  { %v643_v46 = vpop.xlane.xlu1 %642 }
 0x3b9   :  { %2030 = vmatmul.msk.f32.vlgmr.msrb.gmra.mxu3 %vm185_vm8, %v260_v40  ;;  %v2380_v45 = vpop.eup %2379 }
 0x3ba   :  { %v520_v48 = vmul.f32 %v2380_v45, %v2726_v12  ;;  %v2235_v12 = vld [vmem:[%s3084_s7] sm:$0xff] }
 0x3bb   :  { %766 = vmatpush.bf16.msrb.mxu2 %v2235_v12 }
 0x3c1   :  { %2035 = vmatmul.msk.f32.vlgmr.msra.gmra.mxu3 %vm185_vm8, %v389_v42 }
 0x3c2   :  { %v513_v44 = vpop.xlane.xlu0 %512 }
 0x3c3   :  { %2381 = vrcp.f32 %v513_v44 }
 0x3c4   :  { %2383 = vrcp.f32 %v643_v46  ;;  %v2238_v46 = vld [vmem:[%s3088_s11 + $0x8] sm:$0xff] }
 0x3c9   :  { %v2382_v47 = vpop.eup %2381 }
 0x3ca   :  { %v519_v52 = vmul.f32 %v2382_v47, %v2368_v21  ;;  %v2384_v53 = vpop.eup %2383 }
 0x3cb   :  { %v649_v55 = vmul.f32 %v2384_v53, %v2730_v16 }
 0x3d5   :  { %v2293_v49 = vpop.permute.xlu0 %2292 }
 0x3d6   :  { %v2295_v50 = vunpack.i.h.bf16 %v2293_v49  ;;  %v2294_v51 = vunpack.i.l.bf16 %v2293_v49 }
 0x3d8   :  { %542 = vmatpush.msrb.mxu3 %v2294_v51  ;;  %568 = vmatpush.msra.mxu1 %v2295_v50  ;;  %v2237_v50 = vld [vmem:[%s3088_s11] sm:$0xff] }
 0x3d9   :  { %2041 = vmatmul.msk.f32.vlgmr.msrb.gmra.mxu3 %vm185_vm8, %v519_v52  ;;  %2042 = vmatmul.msk.f32.vlgmr.msra.gmra.mxu1 %vm185_vm8, %v520_v48 }
 0x3dd   :  { %v652_v54 = vpop.permute.xlu0 %651 }
 0x3de   :  { %672 = vmatpush.msra.mxu3 %v652_v54 }
 0x3e1   :  { %2047 = vmatmul.msk.f32.vlgmr.msra.gmra.mxu3 %vm185_vm8, %v649_v55 }
 0x3e5   :  { %v678_v56 = vpop.permute.xlu0 %677 }
 0x3e6   :  { %698 = vmatpush.msrb.mxu1 %v678_v56 }
 0x3e8   :  { %861 = vmatpush.bf16.msra.mxu1 %v2238_v46 }
 0x3e9   :  { %v646_v58 = vpop.xlane.xlu2 %645 }
 0x3ea   :  { %2385 = vrcp.f32 %v646_v58 }
 0x3ec   :  { %862 = vmatpush.bf16.msra.mxu1 %v2237_v50 }
 0x3f0   :  { %v2386_v60 = vpop.eup %2385 }
 0x3f1   :  { %v650_v61 = vmul.f32 %v2386_v60, %v2370_v28 }
 0x3f3   :  { %2048 = vmatmul.msk.f32.vlgmr.msrb.gmra.mxu1 %vm185_vm8, %v650_v61 }
 0x431   :  { %v440_v0 = vpop.f32.mrf.mxu1 }
 0x434   :  { %v284_v62 = vpop.f32.mrf.mxu3 }
 0x43c   :  { %v310_v63 = vpop.f32.mrf.mxu3 }
 0x444   :  { %v414_v1 = vpop.f32.mrf.mxu3 }
 0x445   :  { %v2296_v2 = vpack.i.bf16 %v440_v0, %v414_v1 }
 0x447   :  { %2297 = vrot.lane.b32.xlu0 %v2296_v2, %s3103_s28  ;;  %s2222_s28 = sld [smem:[#allocation4 + $0x1]] }
 0x456   :  { %v570_v4 = vpop.f32.mrf.mxu1 }
 0x45c   :  { %v544_v6 = vpop.f32.mrf.mxu3 }
 0x45d   :  { %v2301_v7 = vpack.i.bf16 %v570_v4, %v544_v6  ;;  %v2335_v6 = vld [vmem:[%s3086_s9] ss:$0 sm:$0xff] }
 0x45f   :  { %2302 = vrot.lane.b32.xlu1 %v2301_v7, %s3102_s29 }
 0x464   :  { %v674_v8 = vpop.f32.mrf.mxu3 }
 0x470   :  { %v700_v9 = vpop.f32.mrf.mxu1 }
 0x471   :  { %v2306_v10 = vpack.i.bf16 %v700_v9, %v674_v8 }
 0x473   :  { %2307 = vrot.lane.b32.xlu0 %v2306_v10, %s3101_s30  ;;  %v2336_v10 = vld [vmem:[%s3087_s10] ss:$0 sm:$0xff] }
 0x4b9   :  { %v2298_v14 = vpop.permute.xlu0 %2297 }
 0x4ba   :  { %v2300_v16 = vunpack.i.h.bf16 %v2298_v14  ;;  %v2299_v17 = vunpack.i.l.bf16 %v2298_v14 }
 0x4bc   :  { %v728_v22 = vsel %vm185_vm8, %v310_v63, %v2300_v16  ;;  %v727_v23 = vsel %vm185_vm8, %v284_v62, %v2299_v17 }
 0x4d1   :  { %v2303_v15 = vpop.permute.xlu1 %2302 }
 0x4d2   :  { %v2305_v18 = vunpack.i.h.bf16 %v2303_v15  ;;  %v2304_v20 = vunpack.i.l.bf16 %v2303_v15 }
 0x4d4   :  { %v731_v26 = vsel %vm729_vm10, %v728_v22, %v2305_v18  ;;  %v730_v27 = vsel %vm729_vm10, %v727_v23, %v2304_v20  ;;  %v2246_v18 = vld [vmem:[%s3090_s13 + $0x38] sm:$0xff]  ;;  %v2245_v20 = vld [vmem:[%s3090_s13 + $0x30] sm:$0xff]  ;;  %v2243_v22 = vld [vmem:[%s3090_s13 + $0x20] sm:$0xff] }
 0x4d5   :  { %980 = vmatpush.bf16.msrb.mxu3 %v2246_v18  ;;  %v2242_v23 = vld [vmem:[%s3090_s13 + $0x18] sm:$0xff] }
 0x4d9   :  { %981 = vmatpush.bf16.msrb.mxu3 %v2245_v20  ;;  %v2248_v20 = vld [vmem:[%s3082_s5 + $0x18] sm:$0xff] }
 0x4da   :  { %1086 = vmatpush.bf16.msrb.mxu1 %v2248_v20 }
 0x4e5   :  { %v2308_v21 = vpop.permute.xlu0 %2307 }
 0x4e6   :  { %v2310_v24 = vunpack.i.h.bf16 %v2308_v21  ;;  %v2309_v25 = vunpack.i.l.bf16 %v2308_v21  ;;  %v2244_v21 = vld [vmem:[%s3090_s13 + $0x28] sm:$0xff] }
 0x4e7   :  { %982 = vmatpush.bf16.msrb.mxu3 %v2244_v21 }
 0x4e8   :  { %v734_v28 = vsel %vm732_vm11, %v731_v26, %v2310_v24  ;;  %v733_v29 = vsel %vm732_vm11, %v730_v27, %v2309_v25  ;;  %v2337_v24 = vld [vmem:[%s3119_s25] ss:$0 sm:$0xff]  ;;  %v2241_v26 = vld [vmem:[%s3090_s13 + $0x10] sm:$0xff] }
 0x4e9   :  { %v735_v30 = vpack.c.bf16 %v734_v28, %v733_v29  ;;  %v2240_v29 = vld [vmem:[%s3090_s13 + $0x8] sm:$0xff] }
 0x4eb   :  { %2057 = vmatmul.msk.bf16.vlgmr.msrb.gmra.mxu2 %vm80_vm0, %v735_v30  ;;  %983 = vmatpush.bf16.msrb.mxu3 %v2243_v22 }
 0x4ef   :  { %984 = vmatpush.bf16.msrb.mxu3 %v2242_v23  ;;  %v2247_v23 = vld [vmem:[%s3082_s5 + $0x10] sm:$0xff] }
 0x4f0   :  { %1087 = vmatpush.bf16.msrb.mxu1 %v2247_v23 }
 0x4f3   :  { %985 = vmatpush.bf16.msrb.mxu3 %v2241_v26 }
 0x4f7   :  { %986 = vmatpush.bf16.msrb.mxu3 %v2240_v29 }
 0x56e   :  { %v768_v32 = vpop.f32.mrf.mxu2 }
 0x56f   :  { %v769_v33 = vadd.f32 %v2334_v31, %v768_v32  ;;  %v2239_v32 = vld [vmem:[%s3090_s13] sm:$0xff] }
 0x570   :  { %987 = vmatpush.bf16.msrb.mxu3 %v2239_v32 }
 0x571   :  { %v2775_v34 = vadd.f32 %v769_v33, %v2614_v3 }
 0x573   :  { %v777_v35 = vsel %vm80_vm0, %v2775_v34, 0.0 }
 0x574   :  { %778 = vadd.xlane.f32.xlu0 %v777_v35 }
 0x576   :  { %v770_v36 = vpop.f32.mrf.mxu2 }
 0x577   :  { %v771_v37 = vadd.f32 %v2334_v31, %v770_v36 }
 0x579   :  { %v2780_v57 = vadd.f32 %v771_v37, %v2618_v5 }
 0x57b   :  { %v780_v38 = vsel %vm80_vm0, %v2780_v57, 0.0 }
 0x57c   :  { %781 = vadd.xlane.f32.xlu2 %v780_v38 }
 0x5e7   :  { %v779_v39 = vpop.xlane.xlu0 %778 }
 0x5e8   :  { %v783_v59 = vmul.f32 %v779_v39, %v2622_v13 }
 0x5ea   :  { %v785_v40 = vsub.f32 %v2775_v34, %v783_v59 }
 0x5ec   :  { %v787_v3 = vmul.f32 %v785_v40, %v785_v40 }
 0x5ee   :  { %v789_v41 = vsel %vm80_vm0, %v787_v3, 0.0 }
 0x5ef   :  { %v782_v42 = vpop.xlane.xlu2 %781  ;;  %790 = vadd.xlane.f32.xlu2 %v789_v41 }
 0x5f0   :  { %v784_v43 = vmul.f32 %v782_v42, %v2622_v13 }
 0x5f2   :  { %v786_v44 = vsub.f32 %v2780_v57, %v784_v43 }
 0x5f4   :  { %v788_v5 = vmul.f32 %v786_v44, %v786_v44 }
 0x5f6   :  { %v792_v45 = vsel %vm80_vm0, %v788_v5, 0.0 }
 0x5f7   :  { %793 = vadd.xlane.f32.xlu1 %v792_v45 }
 0x662   :  { %v791_v47 = vpop.xlane.xlu2 %790 }
 0x663   :  { %v795_v49 = vmul.f32 %v791_v47, %v2622_v13 }
 0x665   :  { %v797_v51 = vadd.f32 1e-05, %v795_v49 }
 0x667   :  { %2387 = vrsqrt.f32 %v797_v51  ;;  %vm805_vm13 = vweird.f32 %v797_v51 }
 0x66a   :  { %v794_v48 = vpop.xlane.xlu1 %793 }
 0x66b   :  { %v796_v52 = vmul.f32 %v794_v48, %v2622_v13 }
 0x66d   :  { %v2388_v53 = vpop.eup %2387  ;;  %v798_v54 = vadd.f32 1e-05, %v796_v52 }
 0x66e   :  { %v800_v55 = vmul.f32 %v2388_v53, %v797_v51  ;;  %vm806_vm12 = vweird.f32 %v2388_v53 }
 0x66f   :  { %2389 = vrsqrt.f32 %v798_v54  ;;  %vm807_vm14 = vmor %vm805_vm13, %vm806_vm12  ;;  %vm815_vm1 = vweird.f32 %v798_v54 }
 0x670   :  { %v801_v56 = vmul.f32 %v2388_v53, %v800_v55 }
 0x672   :  { %v802_v58 = vmul.f32 0.5, %v801_v56 }
 0x674   :  { %v803_v60 = vsub.f32 1.5, %v802_v58 }
 0x675   :  { %v2390_v61 = vpop.eup %2389 }
 0x676   :  { %v804_v62 = vmul.f32 %v2388_v53, %v803_v60  ;;  %v810_v63 = vmul.f32 %v2390_v61, %v798_v54  ;;  %vm816_vm15 = vweird.f32 %v2390_v61 }
 0x677   :  { %vm817_vm2 = vmor %vm815_vm1, %vm816_vm15 }
 0x678   :  { %v811_v0 = vmul.f32 %v2390_v61, %v810_v63  ;;  %v808_v1 = vsel %vm807_vm14, %v2388_v53, %v804_v62  ;;  %v2338_v63 = vld [vmem:[%s3091_s14] ss:$0 sm:$0xff] }
 0x679   :  { %v819_v7 = vmul.f32 %v808_v1, %v785_v40 }
 0x67a   :  { %v812_v2 = vmul.f32 0.5, %v811_v0 }
 0x67b   :  { %v824_v11 = vmul.f32 %v2335_v6, %v819_v7 }
 0x67c   :  { %v813_v4 = vsub.f32 1.5, %v812_v2 }
 0x67d   :  { %v829_v15 = vadd.f32 %v2336_v10, %v824_v11 }
 0x67e   :  { %v814_v8 = vmul.f32 %v2390_v61, %v813_v4 }
 0x680   :  { %v818_v9 = vsel %vm817_vm2, %v2390_v61, %v814_v8 }
 0x681   :  { %v820_v12 = vmul.f32 %v818_v9, %v786_v44 }
 0x683   :  { %v825_v14 = vmul.f32 %v2335_v6, %v820_v12 }
 0x685   :  { %v830_v16 = vadd.f32 %v2336_v10, %v825_v14 }
 0x687   :  { %v831_v17 = vpack.c.bf16 %v830_v16, %v829_v15 }
 0x689   :  { %2066 = vmatmul.msk.bf16.vlgmr.msra.gmra.mxu1 %vm80_vm0, %v831_v17 }
 0x706   :  { %v864_v25 = vpop.f32.mrf.mxu1 }
 0x707   :  { %v865_v27 = vadd.f32 %v2337_v24, %v864_v25 }
 0x709   :  { %v2067_v28 = vmul.f32 -1.702, %v865_v27 }
 0x70b   :  { %v873_v30 = vmul.f32 1.442695, %v2067_v28 }
 0x70d   :  { %2391 = vpow2.f32 %v873_v30 }
 0x70e   :  { %v866_v31 = vpop.f32.mrf.mxu1 }
 0x70f   :  { %v867_v33 = vadd.f32 %v2337_v24, %v866_v31 }
 0x711   :  { %v2068_v35 = vmul.f32 -1.702, %v867_v33 }
 0x713   :  { %v2392_v36 = vpop.eup %2391  ;;  %v875_v37 = vmul.f32 1.442695, %v2068_v35 }
 0x714   :  { %v877_v38 = vadd.f32 1.0, %v2392_v36 }
 0x715   :  { %2393 = vpow2.f32 %v875_v37 }
 0x716   :  { %2395 = vrcp.f32 %v877_v38  ;;  %v890_v45 = vand.u32 2147483648, %v877_v38  ;;  %vm884_vm4 = vweird.f32 %v877_v38  ;;  %v888_v46 = vand.u32 2147483647, %v877_v38 }
 0x718   :  { %v891_v52 = vor.u32 1.1754944e-38, %v890_v45  ;;  %vm889_vm7 = vcmp.eq.f32.partialorder %v888_v46, 8.507059e+37 }
 0x71b   :  { %v2394_v39 = vpop.eup %2393 }
 0x71c   :  { %v2396_v59 = vpop.eup %2395  ;;  %v878_v40 = vadd.f32 1.0, %v2394_v39 }
 0x71d   :  { %v880_v3 = vmul.f32 %v2396_v59, %v877_v38  ;;  %vm885_vm3 = vweird.f32 %v2396_v59 }
 0x71e   :  { %2397 = vrcp.f32 %v878_v40  ;;  %vm886_vm5 = vmor %vm884_vm4, %vm885_vm3  ;;  %v905_v49 = vand.u32 2147483648, %v878_v40  ;;  %v903_v48 = vand.u32 2147483647, %v878_v40  ;;  %vm899_vm9 = vweird.f32 %v878_v40 }
 0x71f   :  { %v881_v41 = vsub.f32 1.0, %v880_v3 }
 0x720   :  { %v906_v55 = vor.u32 1.1754944e-38, %v905_v49  ;;  %vm904_vm13 = vcmp.eq.f32.partialorder %v903_v48, 8.507059e+37 }
 0x721   :  { %v882_v42 = vmul.f32 %v2396_v59, %v881_v41 }
 0x723   :  { %v883_v44 = vadd.f32 %v2396_v59, %v882_v42 }
 0x724   :  { %v2398_v43 = vpop.eup %2397 }
 0x725   :  { %v895_v5 = vmul.f32 %v2398_v43, %v878_v40  ;;  %v887_v50 = vsel %vm886_vm5, %v2396_v59, %v883_v44  ;;  %vm900_vm6 = vweird.f32 %v2398_v43  ;;  %v2339_v40 = vld [vmem:[%s3080_s3 + $0x1] ss:$0 sm:$0xff]  ;;  %s3120_s3 = smov 56  }
 0x726   :  { %v892_v54 = vsel %vm889_vm7, %v891_v52, %v887_v50  ;;  %vm901_vm12 = vmor %vm899_vm9, %vm900_vm6  ;;  %v2341_v50 = vld [vmem:[%s3083_s6 + $0x1] ss:$0 sm:$0xff]  ;;  %s3122_s6 = smov 72  }
 0x727   :  { %v896_v47 = vsub.f32 1.0, %v895_v5  ;;  %v909_v60 = vmul.f32 %v892_v54, %v865_v27 }
 0x729   :  { %v897_v51 = vmul.f32 %v2398_v43, %v896_v47 }
 0x72b   :  { %v898_v53 = vadd.f32 %v2398_v43, %v897_v51 }
 0x72d   :  { %v902_v56 = vsel %vm901_vm12, %v2398_v43, %v898_v53  ;;  %v2340_v43 = vld [vmem:[%s3081_s4 + $0x1] ss:$0 sm:$0xff]  ;;  %s3121_s4 = smov 112  }
 0x72e   :  { %v907_v58 = vsel %vm904_vm13, %v906_v55, %v902_v56 }
 0x72f   :  { %v910_v61 = vmul.f32 %v907_v58, %v867_v33 }
 0x731   :  { %v911_v62 = vpack.c.bf16 %v910_v61, %v909_v60 }
 0x733   :  { %988 = vmatmul.bf16.vlgmr.msrb.gmra.mxu3 %v911_v62 }
 0x7b6   :  { %v989_v0 = vpop.f32.mrf.mxu3 }
 0x7b7   :  { %v990_v1 = vadd.f32 %v2338_v63, %v989_v0 }
 0x7b9   :  { %v2836_v2 = vadd.f32 %v990_v1, %v2775_v34 }
 0x7bb   :  { %v1000_v4 = vsel %vm80_vm0, %v2836_v2, 0.0 }
 0x7bc   :  { %1001 = vadd.xlane.f32.xlu2 %v1000_v4 }
 0x7be   :  { %v991_v6 = vpop.f32.mrf.mxu3 }
 0x7bf   :  { %v992_v7 = vadd.f32 %v2338_v63, %v991_v6 }
 0x7c1   :  { %v2841_v8 = vadd.f32 %v992_v7, %v2780_v57 }
 0x7c3   :  { %v1003_v9 = vsel %vm80_vm0, %v2841_v8, 0.0 }
 0x7c4   :  { %1004 = vadd.xlane.f32.xlu2 %v1003_v9 }
 0x82f   :  { %v1002_v10 = vpop.xlane.xlu2 %1001 }
 0x830   :  { %v1006_v11 = vmul.f32 %v1002_v10, %v2622_v13 }
 0x832   :  { %v1008_v12 = vsub.f32 %v2836_v2, %v1006_v11 }
 0x834   :  { %v1010_v34 = vmul.f32 %v1008_v12, %v1008_v12 }
 0x836   :  { %v1012_v14 = vsel %vm80_vm0, %v1010_v34, 0.0 }
 0x837   :  { %1013 = vadd.xlane.f32.xlu2 %v1012_v14  ;;  %v1005_v15 = vpop.xlane.xlu2 %1004 }
 0x838   :  { %v1007_v16 = vmul.f32 %v1005_v15, %v2622_v13 }
 0x83a   :  { %v1009_v17 = vsub.f32 %v2841_v8, %v1007_v16 }
 0x83c   :  { %v1011_v57 = vmul.f32 %v1009_v17, %v1009_v17 }
 0x83e   :  { %v1015_v18 = vsel %vm80_vm0, %v1011_v57, 0.0 }
 0x83f   :  { %1016 = vadd.xlane.f32.xlu2 %v1015_v18 }
 0x8aa   :  { %v1014_v21 = vpop.xlane.xlu2 %1013 }
 0x8ab   :  { %v1018_v22 = vmul.f32 %v1014_v21, %v2622_v13 }
 0x8ad   :  { %v1020_v24 = vadd.f32 1e-05, %v1018_v22 }
 0x8af   :  { %2399 = vrsqrt.f32 %v1020_v24  ;;  %vm1028_vm15 = vweird.f32 %v1020_v24 }
 0x8b2   :  { %v1017_v25 = vpop.xlane.xlu2 %1016 }
 0x8b3   :  { %v1019_v26 = vmul.f32 %v1017_v25, %v2622_v13 }
 0x8b5   :  { %v2400_v27 = vpop.eup %2399  ;;  %v1021_v28 = vadd.f32 1e-05, %v1019_v26 }
 0x8b6   :  { %v1023_v29 = vmul.f32 %v2400_v27, %v1020_v24  ;;  %vm1029_vm14 = vweird.f32 %v2400_v27 }
 0x8b7   :  { %2401 = vrsqrt.f32 %v1021_v28  ;;  %vm1030_vm1 = vmor %vm1028_vm15, %vm1029_vm14  ;;  %vm1038_vm3 = vweird.f32 %v1021_v28 }
 0x8b8   :  { %v1024_v30 = vmul.f32 %v2400_v27, %v1023_v29 }
 0x8ba   :  { %v1025_v31 = vmul.f32 0.5, %v1024_v30 }
 0x8bc   :  { %v1026_v32 = vsub.f32 1.5, %v1025_v31 }
 0x8bd   :  { %v2402_v33 = vpop.eup %2401 }
 0x8be   :  { %v1027_v35 = vmul.f32 %v2400_v27, %v1026_v32  ;;  %v1033_v36 = vmul.f32 %v2402_v33, %v1021_v28  ;;  %vm1039_vm2 = vweird.f32 %v2402_v33 }
 0x8bf   :  { %vm1040_vm4 = vmor %vm1038_vm3, %vm1039_vm2 }
 0x8c0   :  { %v1034_v37 = vmul.f32 %v2402_v33, %v1033_v36  ;;  %v1031_v38 = vsel %vm1030_vm1, %v2400_v27, %v1027_v35 }
 0x8c1   :  { %v1042_v3 = vmul.f32 %v1031_v38, %v1008_v12 }
 0x8c2   :  { %v1035_v39 = vmul.f32 0.5, %v1034_v37 }
 0x8c3   :  { %v1047_v44 = vmul.f32 %v2339_v40, %v1042_v3 }
 0x8c4   :  { %v1036_v59 = vsub.f32 1.5, %v1035_v39 }
 0x8c5   :  { %v1052_v46 = vadd.f32 %v2340_v43, %v1047_v44 }
 0x8c6   :  { %v1037_v41 = vmul.f32 %v2402_v33, %v1036_v59 }
 0x8c8   :  { %v1041_v42 = vsel %vm1040_vm4, %v2402_v33, %v1037_v41  ;;  %vm1927_vm4 = vcmask 1040384  }
 0x8c9   :  { %v1043_v5 = vmul.f32 %v1041_v42, %v1009_v17 }
 0x8cb   :  { %v1048_v45 = vmul.f32 %v2339_v40, %v1043_v5 }
 0x8cd   :  { %v1053_v47 = vadd.f32 %v2340_v43, %v1048_v45 }
 0x8cf   :  { %v1054_v49 = vpack.c.bf16 %v1053_v47, %v1052_v46 }
 0x8d1   :  { %2116 = vmatmul.msk.bf16.vlgmr.msrb.gmra.mxu1 %vm80_vm0, %v1054_v49 }
 0x94e   :  { %v1089_v51 = vpop.f32.mrf.mxu1 }
 0x94f   :  { %v2869_v48 = vadd.f32 %v2341_v50, %v1089_v51 }
 0x951   :  { %1228 = vrot.lane.b32.xlu1 %v2869_v48, %s2492_s20  ;;  %1097 = vrot.lane.b32.xlu2 %v2869_v48, %s2491_s1  ;;  %v2883_v55 = vmul.f32 0.35355338, %v2869_v48 }
 0x956   :  { %v1091_v52 = vpop.f32.mrf.mxu1 }
 0x957   :  { %v2875_v53 = vadd.f32 %v2341_v50, %v1091_v52 }
 0x959   :  { %1125 = vrot.lane.b32.xlu0 %v2875_v53, %s2491_s1  ;;  %1174 = vrot.lane.b32.xlu2 %v2869_v48, %s2499_s24  ;;  %v1095_v54 = vmul.f32 0.35355338, %v2875_v53  ;;  %s3123_s1 = smov 104  }
 0x961   :  { %1254 = vrot.lane.b32.xlu2 %v1095_v54, %s2493_s21  ;;  %1226 = vrot.lane.b32.xlu0 %v2883_v55, %s2493_s21  ;;  %s3125_s21 = smov 40  }
 0x969   :  { %1200 = vrot.lane.b32.xlu0 %v2875_v53, %s2499_s24  ;;  %s3127_s24 = smov 16  }
 0x971   :  { %1386 = vrot.lane.b32.xlu0 %v2875_v53, %s2496_s23 }
 0x9ab   :  { %v1098_v56 = vpop.permute.xlu2 %1097 }
 0x9ac   :  { %2117 = vmatpush.xpose.msk.msra.mxu2 %vm185_vm8, %v1098_v56 }
 0x9af   :  { %2118 = vmatmul.msk.f32.vlgmr.msra.gmra.mxu2 %vm185_vm8, %v2883_v55 }
 0x9b3   :  { %v1175_v58 = vpop.permute.xlu2 %1174 }
 0x9b4   :  { %1195 = vmatpush.msra.mxu1 %v1175_v58 }
 0x9bb   :  { %v1255_v26 = vpop.permute.xlu2 %1254 }
 0x9c3   :  { %v1229_v61 = vpop.permute.xlu1 %1228 }
 0x9cb   :  { %v1126_v60 = vpop.permute.xlu0 %1125 }
 0x9cc   :  { %2119 = vmatpush.xpose.msk.msrb.mxu0 %vm185_vm8, %v1126_v60 }
 0x9cf   :  { %2120 = vmatmul.msk.f32.vlgmr.msrb.gmra.mxu0 %vm185_vm8, %v1095_v54 }
 0x9d0   :  { %2123 = vmatpush.xpose.msk.msra.mxu0 %vm185_vm8, %v1229_v61 }
 0x9d3   :  { %v1227_v62 = vpop.permute.xlu0 %1226 }
 0x9d7   :  { %2124 = vmatmul.msk.f32.vlgmr.msra.gmra.mxu0 %vm185_vm8, %v1227_v62 }
 0x9db   :  { %v1201_v63 = vpop.permute.xlu0 %1200 }
 0x9dc   :  { %1221 = vmatpush.msrb.mxu2 %v1201_v63 }
 0x9e3   :  { %v1387_v57 = vpop.permute.xlu0 %1386 }
 0xa32   :  { %v1121_v0 = vpop.f32.mrf.mxu2 }
 0xa33   :  { %v1122_v1 = vadd.f32 %v1121_v0, %v2692_v19 }
 0xa35   :  { %v1152_v4 = vsel %vm185_vm8, %v1122_v1, -inf }
 0xa36   :  { %1153 = vmax.xlane.f32.xlu1 %v1152_v4 }
 0xa4c   :  { %v1149_v6 = vpop.f32.mrf.mxu0 }
 0xa4d   :  { %v1150_v7 = vadd.f32 %v1149_v6, %v2692_v19 }
 0xa4f   :  { %1304 = vrot.lane.b32.xlu1 %v2869_v48, %s3120_s3  ;;  %v1155_v9 = vsel %vm185_vm8, %v1150_v7, -inf }
 0xa50   :  { %1156 = vmax.xlane.f32.xlu0 %v1155_v9 }
 0xa54   :  { %v1251_v10 = vpop.f32.mrf.mxu0 }
 0xa55   :  { %v1252_v11 = vadd.f32 %v1251_v10, %v2692_v19 }
 0xa57   :  { %1384 = vrot.lane.b32.xlu1 %v1095_v54, %s3121_s4  ;;  %v1282_v12 = vsel %vm185_vm8, %v1252_v11, -inf }
 0xa58   :  { %1283 = vmax.xlane.f32.xlu2 %v1282_v12 }
 0xa5f   :  { %1516 = vrot.lane.b32.xlu1 %v2875_v53, %s3122_s6 }
 0xa64   :  { %1256 = vrot.lane.b32.xlu0 %v2875_v53, %s2492_s20  ;;  %s3124_s20 = smov 48  }
 0xa67   :  { %1356 = vrot.lane.b32.xlu1 %v2883_v55, %s3121_s4 }
 0xaa9   :  { %v1154_v34 = vpop.xlane.xlu1 %1153 }
 0xaaa   :  { %v1158_v14 = vsub.f32 %v1122_v1, %v1154_v34 }
 0xaac   :  { %v1160_v15 = vmul.f32 1.442695, %v1158_v14 }
 0xaae   :  { %2403 = vpow2.f32 %v1160_v15 }
 0xab4   :  { %v2404_v16 = vpop.eup %2403 }
 0xab5   :  { %v1164_v17 = vsel %vm185_vm8, %v2404_v16, 0.0 }
 0xab6   :  { %1165 = vadd.xlane.f32.xlu2 %v1164_v17 }
 0xac1   :  { %v1305_v18 = vpop.permute.xlu1 %1304 }
 0xac2   :  { %1325 = vmatpush.msra.mxu2 %v1305_v18 }
 0xac3   :  { %v1157_v20 = vpop.xlane.xlu0 %1156 }
 0xac4   :  { %v1159_v21 = vsub.f32 %v1150_v7, %v1157_v20  ;;  %v2311_v7 = vpack.i.bf16 %v2869_v48, %v2875_v53 }
 0xac6   :  { %v1162_v22 = vmul.f32 1.442695, %v1159_v21 }
 0xac8   :  { %2405 = vpow2.f32 %v1162_v22 }
 0xac9   :  { %v1385_v33 = vpop.permute.xlu1 %1384 }
 0xacb   :  { %v1284_v27 = vpop.xlane.xlu2 %1283 }
 0xacc   :  { %v1288_v28 = vsub.f32 %v1252_v11, %v1284_v27 }
 0xace   :  { %v2406_v23 = vpop.eup %2405  ;;  %1358 = vrot.lane.b32.xlu2 %v2869_v48, %s2496_s23  ;;  %v1290_v29 = vmul.f32 1.442695, %v1288_v28  ;;  %s3126_s23 = smov 8  }
 0xacf   :  { %v1167_v24 = vsel %vm185_vm8, %v2406_v23, 0.0 }
 0xad0   :  { %1168 = vadd.xlane.f32.xlu0 %v1167_v24  ;;  %2407 = vpow2.f32 %v1290_v29 }
 0xad1   :  { %v1517_v38 = vpop.permute.xlu1 %1516 }
 0xad6   :  { %v1257_v25 = vpop.permute.xlu0 %1256  ;;  %v2408_v30 = vpop.eup %2407 }
 0xad7   :  { %2125 = vmatpush.xpose.msk.msrb.mxu1 %vm185_vm8, %v1257_v25  ;;  %v1294_v31 = vsel %vm185_vm8, %v2408_v30, 0.0 }
 0xad9   :  { %v1357_v39 = vpop.permute.xlu1 %1356 }
 0xae4   :  { %1514 = vrot.lane.b32.xlu0 %v1095_v54, %s3123_s1 }
 0xaec   :  { %1488 = vrot.lane.b32.xlu0 %v2869_v48, %s3122_s6 }
 0xaf7   :  { %1295 = vadd.xlane.f32.xlu2 %v1294_v31 }
 0xb0f   :  { %1486 = vrot.lane.b32.xlu2 %v2883_v55, %s3123_s1 }
 0xb29   :  { %v1166_v32 = vpop.xlane.xlu2 %1165 }
 0xb2a   :  { %2409 = vrcp.f32 %v1166_v32 }
 0xb30   :  { %v2410_v35 = vpop.eup %2409 }
 0xb31   :  { %v1172_v36 = vmul.f32 %v2410_v35, %v2404_v16  ;;  %v1359_v37 = vpop.permute.xlu2 %1358 }
 0xb33   :  { %2121 = vmatmul.msk.f32.vlgmr.msra.gmra.mxu1 %vm185_vm8, %v1172_v36 }
 0xb34   :  { %2129 = vmatpush.xpose.msk.msra.mxu1 %vm185_vm8, %v1359_v37 }
 0xb3b   :  { %2126 = vmatmul.msk.f32.vlgmr.msrb.gmra.mxu1 %vm185_vm8, %v1255_v26 }
 0xb43   :  { %v1169_v59 = vpop.xlane.xlu0 %1168  ;;  %2130 = vmatmul.msk.f32.vlgmr.msra.gmra.mxu1 %vm185_vm8, %v1357_v39 }
 0xb44   :  { %2411 = vrcp.f32 %v1169_v59 }
 0xb4a   :  { %v2412_v40 = vpop.eup %2411 }
 0xb4b   :  { %v1173_v3 = vmul.f32 %v2412_v40, %v2406_v23 }
 0xb4d   :  { %2122 = vmatmul.msk.f32.vlgmr.msrb.gmra.mxu2 %vm185_vm8, %v1173_v3 }
 0xb4e   :  { %2131 = vmatpush.xpose.msk.msrb.mxu2 %vm185_vm8, %v1387_v57 }
 0xb56   :  { %v1515_v41 = vpop.permute.xlu0 %1514 }
 0xb5e   :  { %v1489_v42 = vpop.permute.xlu0 %1488 }
 0xb5f   :  { %2135 = vmatpush.xpose.msk.msrb.mxu1 %vm185_vm8, %v1489_v42 }
 0xb6a   :  { %v1296_v43 = vpop.xlane.xlu2 %1295 }
 0xb6b   :  { %2413 = vrcp.f32 %v1296_v43 }
 0xb71   :  { %v2414_v44 = vpop.eup %2413 }
 0xb72   :  { %v1302_v5 = vmul.f32 %v2414_v44, %v2408_v30  ;;  %v1487_v45 = vpop.permute.xlu2 %1486 }
 0xb73   :  { %2136 = vmatmul.msk.f32.vlgmr.msrb.gmra.mxu1 %vm185_vm8, %v1487_v45 }
 0xb74   :  { %2127 = vmatmul.msk.f32.vlgmr.msra.gmra.mxu2 %vm185_vm8, %v1302_v5 }
 0xb75   :  { %2137 = vmatpush.xpose.msk.msra.mxu2 %vm185_vm8, %v1517_v38 }
 0xb7c   :  { %2132 = vmatmul.msk.f32.vlgmr.msrb.gmra.mxu2 %vm185_vm8, %v1385_v33 }
 0xb84   :  { %2138 = vmatmul.msk.f32.vlgmr.msra.gmra.mxu2 %vm185_vm8, %v1515_v41 }
 0xbb0   :  { %v2937_v46 = vpop.f32.mrf.mxu1 }
 0xbb8   :  { %v1279_v47 = vpop.f32.mrf.mxu1 }
 0xbb9   :  { %v1280_v49 = vadd.f32 %v1279_v47, %v2692_v19 }
 0xbbb   :  { %v1285_v50 = vsel %vm185_vm8, %v1280_v49, -inf }
 0xbbc   :  { %1286 = vmax.xlane.f32.xlu1 %v1285_v50 }
 0xbc0   :  { %v1381_v51 = vpop.f32.mrf.mxu1 }
 0xbc1   :  { %v1382_v52 = vadd.f32 %v1381_v51, %v2692_v19 }
 0xbc3   :  { %v1412_v54 = vsel %vm185_vm8, %v1382_v52, -inf }
 0xbc4   :  { %1413 = vmax.xlane.f32.xlu2 %v1412_v54 }
 0xbd0   :  { %v2943_v55 = vpop.f32.mrf.mxu2 }
 0xbf0   :  { %v1511_v62 = vpop.f32.mrf.mxu1 }
 0xbf1   :  { %v1512_v63 = vadd.f32 %v1511_v62, %v2692_v19 }
 0xbf3   :  { %v1542_v6 = vsel %vm185_vm8, %v1512_v63, -inf }
 0xbf7   :  { %v2945_v56 = vpop.f32.mrf.mxu2 }
 0xbff   :  { %v1409_v58 = vpop.f32.mrf.mxu2 }
 0xc00   :  { %v1410_v60 = vadd.f32 %v1409_v58, %v2692_v19 }
 0xc02   :  { %v1415_v61 = vsel %vm185_vm8, %v1410_v60, -inf }
 0xc03   :  { %1416 = vmax.xlane.f32.xlu0 %v1415_v61 }
 0xc07   :  { %v1539_v0 = vpop.f32.mrf.mxu2 }
 0xc08   :  { %v1540_v1 = vadd.f32 %v1539_v0, %v2692_v19 }
 0xc0a   :  { %v1545_v4 = vsel %vm185_vm8, %v1540_v1, -inf }
 0xc0b   :  { %1546 = vmax.xlane.f32.xlu1 %v1545_v4  ;;  %1543 = vmax.xlane.f32.xlu0 %v1542_v6 }
 0xc1f   :  { %2312 = vrot.lane.b32.xlu0 %v2311_v7, %s3124_s20  ;;  %s2506_s20 = smov [#allocation5]  }
 0xc2f   :  { %v1287_v9 = vpop.xlane.xlu1 %1286 }
 0xc30   :  { %v1289_v10 = vsub.f32 %v1280_v49, %v1287_v9 }
 0xc32   :  { %v1292_v11 = vmul.f32 1.442695, %v1289_v10 }
 0xc34   :  { %2415 = vpow2.f32 %v1292_v11 }
 0xc37   :  { %v1414_v12 = vpop.xlane.xlu2 %1413 }
 0xc38   :  { %v1418_v34 = vsub.f32 %v1382_v52, %v1414_v12 }
 0xc3a   :  { %v2416_v14 = vpop.eup %2415  ;;  %v1420_v15 = vmul.f32 1.442695, %v1418_v34 }
 0xc3b   :  { %v1297_v19 = vsel %vm185_vm8, %v2416_v14, 0.0 }
 0xc3c   :  { %1298 = vadd.xlane.f32.xlu2 %v1297_v19  ;;  %2417 = vpow2.f32 %v1420_v15 }
 0xc42   :  { %v2418_v16 = vpop.eup %2417 }
 0xc43   :  { %v1424_v17 = vsel %vm185_vm8, %v2418_v16, 0.0 }
 0xc49   :  { %1425 = vadd.xlane.f32.xlu0 %v1424_v17 }
 0xc54   :  { %1330 = vrot.lane.b32.xlu2 %v2875_v53, %s3120_s3 }
 0xc5d   :  { %1564 = vrot.lane.b32.xlu0 %v2869_v48, %s3125_s21 }
 0xc76   :  { %v1417_v57 = vpop.xlane.xlu0 %1416 }
 0xc77   :  { %v1419_v18 = vsub.f32 %v1410_v60, %v1417_v57 }
 0xc79   :  { %v1422_v20 = vmul.f32 1.442695, %v1419_v18 }
 0xc7b   :  { %2419 = vpow2.f32 %v1422_v20 }
 0xc7e   :  { %v1544_v21 = vpop.xlane.xlu0 %1543  ;;  %v1547_v22 = vpop.xlane.xlu1 %1546 }
 0xc7f   :  { %v1548_v23 = vsub.f32 %v1512_v63, %v1544_v21  ;;  %v1549_v26 = vsub.f32 %v1540_v1, %v1547_v22  ;;  %v2250_v1 = vld [vmem:[%s3084_s7 + $0x18] sm:$0xff] }
 0xc80   :  { %1678 = vmatpush.bf16.msra.mxu1 %v2250_v1 }
 0xc81   :  { %v2420_v24 = vpop.eup %2419  ;;  %v1550_v25 = vmul.f32 1.442695, %v1548_v23  ;;  %v1552_v28 = vmul.f32 1.442695, %v1549_v26 }
 0xc82   :  { %v1427_v27 = vsel %vm185_vm8, %v2420_v24, 0.0 }
 0xc83   :  { %2421 = vpow2.f32 %v1550_v25  ;;  %1428 = vadd.xlane.f32.xlu1 %v1427_v27 }
 0xc84   :  { %2423 = vpow2.f32 %v1552_v28 }
 0xc89   :  { %v2422_v29 = vpop.eup %2421 }
 0xc8a   :  { %v1554_v30 = vsel %vm185_vm8, %v2422_v29, 0.0  ;;  %v2424_v48 = vpop.eup %2423 }
 0xc8b   :  { %1555 = vadd.xlane.f32.xlu1 %v1554_v30  ;;  %v1557_v33 = vsel %vm185_vm8, %v2424_v48, 0.0 }
 0xc91   :  { %v2313_v31 = vpop.permute.xlu0 %2312 }
 0xc92   :  { %v2314_v32 = vunpack.i.l.bf16 %v2313_v31  ;;  %v2315_v39 = vunpack.i.h.bf16 %v2313_v31 }
 0xc93   :  { %1558 = vadd.xlane.f32.xlu1 %v1557_v33 }
 0xc94   :  { %1481 = vmatpush.msra.mxu3 %v2314_v32 }
 0xcac   :  { %1590 = vrot.lane.b32.xlu1 %v2875_v53, %s3125_s21 }
 0xcaf   :  { %v1299_v35 = vpop.xlane.xlu2 %1298 }
 0xcb0   :  { %2425 = vrcp.f32 %v1299_v35 }
 0xcb6   :  { %v2426_v36 = vpop.eup %2425 }
 0xcb7   :  { %v1303_v37 = vmul.f32 %v2426_v36, %v2416_v14  ;;  %v1331_v38 = vpop.permute.xlu2 %1330  ;;  %v2252_v36 = vld [vmem:[%s3088_s11 + $0x18] sm:$0xff] }
 0xcb8   :  { %1351 = vmatpush.msrb.mxu0 %v1331_v38  ;;  %1778 = vmatpush.bf16.msrb.mxu2 %v2252_v36 }
 0xcb9   :  { %2128 = vmatmul.msk.f32.vlgmr.msrb.gmra.mxu0 %vm185_vm8, %v1303_v37 }
 0xcba   :  { %1455 = vmatpush.msra.mxu0 %v2315_v39 }
 0xcbc   :  { %v1426_v59 = vpop.xlane.xlu0 %1425 }
 0xcbd   :  { %2427 = vrcp.f32 %v1426_v59  ;;  %v2251_v59 = vld [vmem:[%s3088_s11 + $0x10] sm:$0xff]  ;;  %s2014_s11 = scalar_lea.vmem [#allocation2], %s2222_s28 }
 0xcbe   :  { %1779 = vmatpush.bf16.msrb.mxu2 %v2251_v59 }
 0xcc3   :  { %v2428_v40 = vpop.eup %2427 }
 0xcc4   :  { %v1432_v3 = vmul.f32 %v2428_v40, %v2418_v16 }
 0xcc6   :  { %2133 = vmatmul.msk.f32.vlgmr.msra.gmra.mxu0 %vm185_vm8, %v1432_v3 }
 0xccf   :  { %v1565_v41 = vpop.permute.xlu0 %1564 }
 0xcd0   :  { %1585 = vmatpush.msrb.mxu0 %v1565_v41 }
 0xcf6   :  { %v1429_v42 = vpop.xlane.xlu1 %1428 }
 0xcf7   :  { %2429 = vrcp.f32 %v1429_v42 }
 0xcfd   :  { %v2430_v53 = vpop.eup %2429 }
 0xcfe   :  { %v1433_v43 = vmul.f32 %v2430_v53, %v2420_v24  ;;  %v1556_v44 = vpop.xlane.xlu1 %1555 }
 0xcff   :  { %2431 = vrcp.f32 %v1556_v44 }
 0xd00   :  { %2134 = vmatmul.msk.f32.vlgmr.msra.gmra.mxu3 %vm185_vm8, %v1433_v43 }
 0xd05   :  { %v2432_v5 = vpop.eup %2431 }
 0xd06   :  { %v1562_v45 = vmul.f32 %v2432_v5, %v2422_v29  ;;  %v1559_v47 = vpop.xlane.xlu1 %1558 }
 0xd07   :  { %2433 = vrcp.f32 %v1559_v47 }
 0xd08   :  { %2139 = vmatmul.msk.f32.vlgmr.msrb.gmra.mxu0 %vm185_vm8, %v1562_v45 }
 0xd0d   :  { %v2434_v49 = vpop.eup %2433 }
 0xd0e   :  { %v1563_v50 = vmul.f32 %v2434_v49, %v2424_v48 }
 0xd1e   :  { %v1591_v51 = vpop.permute.xlu1 %1590 }
 0xd1f   :  { %1611 = vmatpush.msrb.mxu3 %v1591_v51 }
 0xd20   :  { %2140 = vmatmul.msk.f32.vlgmr.msrb.gmra.mxu3 %vm185_vm8, %v1563_v50 }
 0xd36   :  { %v1353_v52 = vpop.f32.mrf.mxu0 }
 0xd37   :  { %v2316_v54 = vpack.i.bf16 %v1353_v52, %v2945_v56  ;;  %v2249_v56 = vld [vmem:[%s3084_s7 + $0x10] sm:$0xff] }
 0xd38   :  { %1679 = vmatpush.bf16.msra.mxu1 %v2249_v56 }
 0xd39   :  { %2317 = vrot.lane.b32.xlu2 %v2316_v54, %s3126_s23 }
 0xd43   :  { %v1457_v58 = vpop.f32.mrf.mxu0 }
 0xd83   :  { %v1483_v60 = vpop.f32.mrf.mxu3 }
 0xd84   :  { %v2321_v61 = vpack.i.bf16 %v1483_v60, %v1457_v58  ;;  %v2343_v58 = vld [vmem:[%s3086_s9 + $0x1] ss:$0 sm:$0xff] }
 0xd85   :  { %v1587_v62 = vpop.f32.mrf.mxu0 }
 0xd86   :  { %2322 = vrot.lane.b32.xlu0 %v2321_v61, %s3127_s24  ;;  %s2004_s24 = sshll.u32 %s3095_s18, 4  ;;  %s2005_s24 = int_to_ptr.hbm [resolvable:$true] %s2004_s24 }
 0xd93   :  { %v2318_v4 = vpop.permute.xlu2 %2317 }
 0xd94   :  { %v2320_v7 = vunpack.i.h.bf16 %v2318_v4  ;;  %v2319_v9 = vunpack.i.l.bf16 %v2318_v4 }
 0xd96   :  { %v1641_v34 = vsel %vm185_vm8, %v2943_v55, %v2320_v7  ;;  %v1640_v14 = vsel %vm185_vm8, %v2937_v46, %v2319_v9  ;;  %v2342_v55 = vld [vmem:[%s3085_s8 + $0x1] ss:$0 sm:$0xff]  ;;  %v2260_v9 = vld [vmem:[%s3090_s13 + $0x78] sm:$0xff] }
 0xd97   :  { %1899 = vmatpush.bf16.msra.mxu0 %v2260_v9 }
 0xda3   :  { %v1613_v63 = vpop.f32.mrf.mxu3 }
 0xda4   :  { %v2326_v0 = vpack.i.bf16 %v1613_v63, %v1587_v62  ;;  %v2344_v63 = vld [vmem:[%s3087_s10 + $0x1] ss:$0 sm:$0xff]  ;;  %s2002_s10 = sshll.u32 %s2506_s20, 4  ;;  %s2003_s10 = int_to_ptr.vmem [resolvable:$true] %s2002_s10 }
 0xda6   :  { %2327 = vrot.lane.b32.xlu2 %v2326_v0, %s3128_s27 }
 0xdf8   :  { %v2323_v6 = vpop.permute.xlu0 %2322 }
 0xdf9   :  { %v2325_v10 = vunpack.i.h.bf16 %v2323_v6  ;;  %v2324_v11 = vunpack.i.l.bf16 %v2323_v6 }
 0xdfb   :  { %v1643_v16 = vsel %vm729_vm10, %v1641_v34, %v2325_v10  ;;  %v1642_v17 = vsel %vm729_vm10, %v1640_v14, %v2324_v11  ;;  %v2259_v10 = vld [vmem:[%s3090_s13 + $0x70] sm:$0xff]  ;;  %v2258_v11 = vld [vmem:[%s3090_s13 + $0x68] sm:$0xff]  ;;  %v2345_v34 = vld [vmem:[%s3119_s25 + $0x1] ss:$0 sm:$0xff] }
 0xdfc   :  { %1900 = vmatpush.bf16.msra.mxu0 %v2259_v10  ;;  %v2256_v14 = vld [vmem:[%s3090_s13 + $0x58] sm:$0xff] }
 0xe00   :  { %v2328_v12 = vpop.permute.xlu2 %2327  ;;  %1901 = vmatpush.bf16.msra.mxu0 %v2258_v11 }
 0xe01   :  { %v2330_v15 = vunpack.i.h.bf16 %v2328_v12  ;;  %v2329_v19 = vunpack.i.l.bf16 %v2328_v12  ;;  %v2257_v12 = vld [vmem:[%s3090_s13 + $0x60] sm:$0xff] }
 0xe03   :  { %v1645_v57 = vsel %vm732_vm11, %v1643_v16, %v2330_v15  ;;  %v1644_v18 = vsel %vm732_vm11, %v1642_v17, %v2329_v19  ;;  %v2255_v16 = vld [vmem:[%s3090_s13 + $0x50] sm:$0xff] }
 0xe04   :  { %v1646_v20 = vpack.c.bf16 %v1645_v57, %v1644_v18  ;;  %1902 = vmatpush.bf16.msra.mxu0 %v2257_v12  ;;  %v2254_v18 = vld [vmem:[%s3090_s13 + $0x48] sm:$0xff] }
 0xe06   :  { %2154 = vmatmul.msk.bf16.vlgmr.msra.gmra.mxu1 %vm80_vm0, %v1646_v20 }
 0xe08   :  { %1903 = vmatpush.bf16.msra.mxu0 %v2256_v14 }
 0xe0c   :  { %1904 = vmatpush.bf16.msra.mxu0 %v2255_v16 }
 0xe10   :  { %1905 = vmatpush.bf16.msra.mxu0 %v2254_v18 }
 0xe83   :  { %v1681_v21 = vpop.f32.mrf.mxu1 }
 0xe84   :  { %v1682_v22 = vadd.f32 %v2342_v55, %v1681_v21  ;;  %v2253_v21 = vld [vmem:[%s3090_s13 + $0x40] sm:$0xff] }
 0xe85   :  { %1906 = vmatpush.bf16.msra.mxu0 %v2253_v21 }
 0xe86   :  { %v2995_v46 = vadd.f32 %v1682_v22, %v2836_v2 }
 0xe88   :  { %v1692_v23 = vsel %vm80_vm0, %v2995_v46, 0.0 }
 0xe89   :  { %1693 = vadd.xlane.f32.xlu0 %v1692_v23 }
 0xe8b   :  { %v1683_v24 = vpop.f32.mrf.mxu1 }
 0xe8c   :  { %v1684_v25 = vadd.f32 %v2342_v55, %v1683_v24 }
 0xe8e   :  { %v3000_v26 = vadd.f32 %v1684_v25, %v2841_v8 }
 0xe90   :  { %v1695_v27 = vsel %vm80_vm0, %v3000_v26, 0.0 }
 0xe91   :  { %1696 = vadd.xlane.f32.xlu2 %v1695_v27 }
 0xefc   :  { %v1694_v28 = vpop.xlane.xlu0 %1693 }
 0xefd   :  { %v1698_v29 = vmul.f32 %v1694_v28, %v2622_v13 }
 0xeff   :  { %v1700_v30 = vsub.f32 %v2995_v46, %v1698_v29 }
 0xf01   :  { %v1702_v2 = vmul.f32 %v1700_v30, %v1700_v30 }
 0xf03   :  { %v1704_v48 = vsel %vm80_vm0, %v1702_v2, 0.0 }
 0xf04   :  { %v1697_v31 = vpop.xlane.xlu2 %1696  ;;  %1705 = vadd.xlane.f32.xlu1 %v1704_v48 }
 0xf05   :  { %v1699_v32 = vmul.f32 %v1697_v31, %v2622_v13 }
 0xf07   :  { %v1701_v33 = vsub.f32 %v3000_v26, %v1699_v32 }
 0xf09   :  { %v1703_v8 = vmul.f32 %v1701_v33, %v1701_v33 }
 0xf0b   :  { %v1707_v35 = vsel %vm80_vm0, %v1703_v8, 0.0 }
 0xf0c   :  { %1708 = vadd.xlane.f32.xlu2 %v1707_v35 }
 0xf77   :  { %v1706_v37 = vpop.xlane.xlu1 %1705 }
 0xf78   :  { %v1710_v38 = vmul.f32 %v1706_v37, %v2622_v13 }
 0xf7a   :  { %v1712_v39 = vadd.f32 1e-05, %v1710_v38 }
 0xf7c   :  { %2435 = vrsqrt.f32 %v1712_v39  ;;  %vm1720_vm10 = vweird.f32 %v1712_v39 }
 0xf7f   :  { %v1709_v40 = vpop.xlane.xlu2 %1708 }
 0xf80   :  { %v1711_v3 = vmul.f32 %v1709_v40, %v2622_v13 }
 0xf82   :  { %v2436_v41 = vpop.eup %2435  ;;  %v1713_v42 = vadd.f32 1e-05, %v1711_v3 }
 0xf83   :  { %v1715_v53 = vmul.f32 %v2436_v41, %v1712_v39  ;;  %vm1721_vm8 = vweird.f32 %v2436_v41 }
 0xf84   :  { %2437 = vrsqrt.f32 %v1713_v42  ;;  %vm1722_vm11 = vmor %vm1720_vm10, %vm1721_vm8  ;;  %vm1730_vm6 = vweird.f32 %v1713_v42  ;;  %vm1931_vm8 = vcmask 254976  }
 0xf85   :  { %v1716_v43 = vmul.f32 %v2436_v41, %v1715_v53 }
 0xf87   :  { %v1717_v44 = vmul.f32 0.5, %v1716_v43 }
 0xf89   :  { %v1718_v5 = vsub.f32 1.5, %v1717_v44 }
 0xf8a   :  { %v2438_v45 = vpop.eup %2437 }
 0xf8b   :  { %v1719_v47 = vmul.f32 %v2436_v41, %v1718_v5  ;;  %v1725_v49 = vmul.f32 %v2438_v45, %v1713_v42  ;;  %vm1731_vm5 = vweird.f32 %v2438_v45 }
 0xf8c   :  { %vm1732_vm7 = vmor %vm1730_vm6, %vm1731_vm5  ;;  %vm1995_vm6 = vcmask 123904  }
 0xf8d   :  { %v1726_v50 = vmul.f32 %v2438_v45, %v1725_v49  ;;  %v1723_v51 = vsel %vm1722_vm11, %v2436_v41, %v1719_v47  ;;  %v2346_v47 = vld [vmem:[%s3091_s14 + $0x1] ss:$0 sm:$0xff]  ;;  %s1918_s14 = scalar_lea.vmem [#allocation2], %s1917_s22 }
 0xf8e   :  { %v1734_v60 = vmul.f32 %v1723_v51, %v1700_v30 }
 0xf8f   :  { %v1727_v52 = vmul.f32 0.5, %v1726_v50 }
 0xf90   :  { %v1739_v0 = vmul.f32 %v2343_v58, %v1734_v60 }
 0xf91   :  { %v1728_v54 = vsub.f32 1.5, %v1727_v52 }
 0xf92   :  { %v1744_v4 = vadd.f32 %v2344_v63, %v1739_v0 }
 0xf93   :  { %v1729_v61 = vmul.f32 %v2438_v45, %v1728_v54 }
 0xf95   :  { %v1733_v62 = vsel %vm1732_vm7, %v2438_v45, %v1729_v61 }
 0xf96   :  { %v1735_v1 = vmul.f32 %v1733_v62, %v1701_v33 }
 0xf98   :  { %v1740_v56 = vmul.f32 %v2343_v58, %v1735_v1 }
 0xf9a   :  { %v1745_v6 = vadd.f32 %v2344_v63, %v1740_v56 }
 0xf9c   :  { %v1746_v7 = vpack.c.bf16 %v1745_v6, %v1744_v4 }
 0xf9e   :  { %2170 = vmatmul.msk.bf16.vlgmr.msrb.gmra.mxu2 %vm80_vm0, %v1746_v7  ;;  %v2261_v7 = vld [vmem:[%s3094_s17] sm:$0xff] }
0x1021   :  { %v1781_v15 = vpop.f32.mrf.mxu2 }
0x1022   :  { %v1782_v19 = vadd.f32 %v2345_v34, %v1781_v15 }
0x1024   :  { %v2171_v17 = vmul.f32 -1.702, %v1782_v19 }
0x1026   :  { %v1790_v57 = vmul.f32 1.442695, %v2171_v17  ;;  %v2347_v17 = vld [vmem:[%s3092_s15] ss:$0 sm:$0xff] }
0x1028   :  { %2439 = vpow2.f32 %v1790_v57 }
0x1029   :  { %v1783_v20 = vpop.f32.mrf.mxu2 }
0x102a   :  { %v1784_v55 = vadd.f32 %v2345_v34, %v1783_v20 }
0x102c   :  { %v2172_v22 = vmul.f32 -1.702, %v1784_v55 }
0x102e   :  { %v2440_v23 = vpop.eup %2439  ;;  %v1792_v24 = vmul.f32 1.442695, %v2172_v22 }
0x102f   :  { %v1794_v25 = vadd.f32 1.0, %v2440_v23 }
0x1030   :  { %2441 = vpow2.f32 %v1792_v24 }
0x1031   :  { %2443 = vrcp.f32 %v1794_v25  ;;  %v1807_v8 = vand.u32 2147483648, %v1794_v25  ;;  %vm1801_vm12 = vweird.f32 %v1794_v25  ;;  %v1805_v35 = vand.u32 2147483647, %v1794_v25 }
0x1033   :  { %v1808_v40 = vor.u32 1.1754944e-38, %v1807_v8  ;;  %vm1806_vm15 = vcmp.eq.f32.partialorder %v1805_v35, 8.507059e+37 }
0x1036   :  { %v2442_v27 = vpop.eup %2441 }
0x1037   :  { %v2444_v28 = vpop.eup %2443  ;;  %v1795_v29 = vadd.f32 1.0, %v2442_v27 }
0x1038   :  { %v1797_v30 = vmul.f32 %v2444_v28, %v1794_v25  ;;  %vm1802_vm9 = vweird.f32 %v2444_v28 }
0x1039   :  { %2445 = vrcp.f32 %v1795_v29  ;;  %vm1803_vm13 = vmor %vm1801_vm12, %vm1802_vm9  ;;  %v1822_v37 = vand.u32 2147483648, %v1795_v29  ;;  %v1820_v59 = vand.u32 2147483647, %v1795_v29  ;;  %vm1816_vm1 = vweird.f32 %v1795_v29 }
0x103a   :  { %v1798_v2 = vsub.f32 1.0, %v1797_v30 }
0x103b   :  { %v1823_v42 = vor.u32 1.1754944e-38, %v1822_v37  ;;  %vm1821_vm3 = vcmp.eq.f32.partialorder %v1820_v59, 8.507059e+37 }
0x103c   :  { %v1799_v48 = vmul.f32 %v2444_v28, %v1798_v2 }
0x103e   :  { %v1800_v32 = vadd.f32 %v2444_v28, %v1799_v48 }
0x103f   :  { %v2446_v31 = vpop.eup %2445 }
0x1040   :  { %v1812_v33 = vmul.f32 %v2446_v31, %v1795_v29  ;;  %v1804_v38 = vsel %vm1803_vm13, %v2444_v28, %v1800_v32  ;;  %vm1817_vm14 = vweird.f32 %v2446_v31 }
0x1041   :  { %v1809_v41 = vsel %vm1806_vm15, %v1808_v40, %v1804_v38  ;;  %vm1818_vm2 = vmor %vm1816_vm1, %vm1817_vm14 }
0x1042   :  { %v1813_v36 = vsub.f32 1.0, %v1812_v33  ;;  %v1826_v44 = vmul.f32 %v1809_v41, %v1782_v19 }
0x1044   :  { %v1814_v39 = vmul.f32 %v2446_v31, %v1813_v36 }
0x1046   :  { %v1815_v3 = vadd.f32 %v2446_v31, %v1814_v39 }
0x1048   :  { %v1819_v53 = vsel %vm1818_vm2, %v2446_v31, %v1815_v3 }
0x1049   :  { %v1824_v43 = vsel %vm1821_vm3, %v1823_v42, %v1819_v53 }
0x104a   :  { %v1827_v5 = vmul.f32 %v1824_v43, %v1784_v55 }
0x104c   :  { %v1828_v45 = vpack.c.bf16 %v1827_v5, %v1826_v44 }
0x104e   :  { %1907 = vmatmul.bf16.vlgmr.msra.gmra.mxu0 %v1828_v45 }
0x10cb   :  { %v1908_v49 = vpop.f32.mrf.mxu0 }
0x10cc   :  { %v1909_v50 = vadd.f32 %v2346_v47, %v1908_v49 }
0x10ce   :  { %v1913_v51 = vadd.f32 %v1909_v50, %v2995_v46 }
0x10d0   :  { %1915 = vst.msk [vmem:[#allocation2] sm:$0xff] %vm80_vm0, %v1913_v51 }
0x10d3   :  { %v1910_v52 = vpop.f32.mrf.mxu0 }
0x10d4   :  { %v1911_v54 = vadd.f32 %v2346_v47, %v1910_v52 }
0x10d6   :  { %v1914_v58 = vadd.f32 %v1911_v54, %v3000_v26  ;;  %v2262_v26 = vld [vmem:[%s3094_s17 + $0x8] sm:$0xff] }
0x10d7   :  { %1988 = vmatpush.bf16.msra.mxu3 %v2262_v26 }
0x10d8   :  { %1916 = vst.msk [vmem:[#allocation2 + $0x8] sm:$0xff] %vm80_vm0, %v1914_v58 }
0x10db   :  { %1989 = vmatpush.bf16.msra.mxu3 %v2261_v7 }
0x10df   :  { %v2223_v60 = vld [vmem:[%s2014_s11 + $0x8] sm:$0x1]  ;;  %v1919_v62 = vld [vmem:[%s1918_s14] sm:$0x1] }
0x10e0   :  { %v1925_v61 = vrot.slane %v2223_v60, 7 }
0x10e2   :  { %v1928_v63 = vsel %vm1927_vm4, %v1919_v62, %v1925_v61 }
0x10e3   :  { %v1932_v0 = vsel %vm1931_vm8, %v1928_v63, 0.0 }
0x10e4   :  { %1933 = vadd.xlane.f32.xlu0 %v1932_v0 }
0x1157   :  { %v1934_v46 = vpop.xlane.xlu0 %1933 }
0x1158   :  { %v1935_v1 = vmul.f32 %v1934_v46, %v2622_v13 }
0x115a   :  { %v1936_v56 = vsub.f32 %v1928_v63, %v1935_v1 }
0x115c   :  { %v1937_v4 = vmul.f32 %v1936_v56, %v1936_v56 }
0x115e   :  { %v1938_v6 = vsel %vm1931_vm8, %v1937_v4, 0.0 }
0x115f   :  { %1939 = vadd.xlane.f32.xlu1 %v1938_v6 }
0x11d2   :  { %v1940_v9 = vpop.xlane.xlu1 %1939 }
0x11d3   :  { %v1941_v10 = vmul.f32 %v1940_v9, %v2622_v13  ;;  %v2348_v13 = vld [vmem:[%s3093_s16] ss:$0 sm:$0xff] }
0x11d5   :  { %v1942_v11 = vadd.f32 1e-05, %v1941_v10 }
0x11d7   :  { %2447 = vrsqrt.f32 %v1942_v11  ;;  %vm1949_vm11 = vweird.f32 %v1942_v11 }
0x11dd   :  { %v2448_v12 = vpop.eup %2447 }
0x11de   :  { %v1944_v34 = vmul.f32 %v2448_v12, %v1942_v11  ;;  %vm1950_vm10 = vweird.f32 %v2448_v12 }
0x11df   :  { %vm1951_vm5 = vmor %vm1949_vm11, %vm1950_vm10 }
0x11e0   :  { %v1945_v14 = vmul.f32 %v2448_v12, %v1944_v34 }
0x11e2   :  { %v1946_v15 = vmul.f32 0.5, %v1945_v14 }
0x11e4   :  { %v1947_v19 = vsub.f32 1.5, %v1946_v15 }
0x11e6   :  { %v1948_v16 = vmul.f32 %v2448_v12, %v1947_v19 }
0x11e8   :  { %v1952_v57 = vsel %vm1951_vm5, %v2448_v12, %v1948_v16 }
0x11e9   :  { %v1953_v18 = vmul.f32 %v1952_v57, %v1936_v56 }
0x11eb   :  { %v1957_v20 = vmul.f32 %v2347_v17, %v1953_v18 }
0x11ed   :  { %v1961_v55 = vadd.f32 %v2348_v13, %v1957_v20 }
0x11ef   :  { %v1962_v21 = vpack.c.bf16 %v1961_v55, %v1961_v55 }
0x11f1   :  { %2232 = vmatmul.msk.bf16.vlgmr.msra.gmra.mxu3 %vm80_vm0, %v1962_v21 }
0x1274   :  { %v1991_v22 = vpop.f32.mrf.mxu3 }
0x1275   :  { %1996 = vst.msk [vmem:[#allocation5] sm:$0x3] %vm1995_vm6, %v1991_v22 }
0x1276   :  { %2007 = dma.vmem_to_hbm [thread:$0]  %s2003_s10, 32, %s2005_s24, [#allocation6]  }
0x127c   :  { %v1993_v23 = vpop.f32.mrf.mxu3 }
0x127d   :  { %2487 = dma.done.wait [#allocation6], 32  }
0x127e   :  { %2488 = vsyncadd [#allocation6], 4294967264 }
0x127f   :  { %2012 = vsyncpa [#allocation6], 1 }

</bundles_post_ra>
